<compile_context>
chip_gen: v7x
topology: tpu7x:2x2x1
jax: 0.10.0
libtpu: 0.0.40
codegen_flags: <defaults>
</compile_context>

<pallas_src>
import jax
import jax.numpy as jnp
from jax.experimental import pallas as pl
from jax.experimental.pallas import tpu as pltpu

EMB = 10          # emb_size
HID = EMB // 3    # int(10/3) == 3
C_IN = 256        # BatchNorm1d(256) => channel dim of the input
W_IN = 300        # conv kernel width (1, 300) => squeeze(3) forces width == 300
CLASSES = 2
N_BLOCKS = 3      # encoder (2 blocks) + last (1 block), identical shapes
BN_EPS = 1e-5


# --------------------------------------------------------------------------
# Kernel 1: conv-as-matmul + folded input BN + ReLU + channel-mean pooling.
# HBM-bound on x; one big MXU matmul per batch tile.
# --------------------------------------------------------------------------
def conv_pool_kernel(x_ref, cb_ref, cw_ref, h_ref):
    tb = h_ref.shape[0]
    # x arrives f32 (no extra HBM pass in the wrapper); cast to bf16
    # in-register right before the dot, accumulate in f32 on the MXU.
    y = jnp.dot(x_ref[...].astype(jnp.bfloat16), cw_ref[...],
                preferred_element_type=jnp.float32)            # (tb*256, 10)
    cb = cb_ref[...]                                           # (256, 11) packed
    scale = cb[:, EMB:EMB + 1]                                 # (256, 1)  BN scale
    bias = cb[:, :EMB]                                         # (256, 10) folded bias
    # Eval-mode input BatchNorm1d(256) folded into post-matmul scale + bias:
    #   y[c,e] = s[c]*(x[c,:]@W)[e] + (t[c]*sum_w W[w,e] + conv_b[e])
    y = y.reshape(tb, C_IN, EMB)           # un-collapse of non-minor dims (view)
    y = jnp.maximum(y * scale[None] + bias[None], 0.0)         # BN + ReLU
    h_ref[...] = jnp.mean(y, axis=1)                           # avg_pool -> (tb, 10)


# --------------------------------------------------------------------------
# Kernel 2: 3 linear_blocks + residual + decoder on the pooled activations.
# Runs once over the whole batch (tiled only for very large B); compute is
# tiny, so it is hoisted out of the hot per-tile loop of kernel 1.
# --------------------------------------------------------------------------
def head_kernel(h_ref, bs1_ref, bt1_ref, w1_ref, b1_ref,
                bs2_ref, bt2_ref, w2_ref, b2_ref, dw_ref, db_ref, out_ref):
    h = h_ref[...]                                             # (tbh, 10)
    h_org = h
    for blk in range(N_BLOCKS):                                # static unroll
        hb = h * bs1_ref[blk] + bt1_ref[blk]                   # BN(10), eval
        z = jnp.dot(hb, w1_ref[blk],
                    preferred_element_type=jnp.float32) + b1_ref[blk]   # Linear(10,3)
        z = jnp.maximum(z, 0.0)
        zb = z * bs2_ref[blk] + bt2_ref[blk]                   # BN(3), eval
        h = jnp.dot(zb, w2_ref[blk],
                    preferred_element_type=jnp.float32) + b2_ref[blk]   # Linear(3,10)
        h = jnp.maximum(h, 0.0)
    h = h + h_org                                              # residual
    out_ref[...] = jnp.dot(h, dw_ref[...],
                           preferred_element_type=jnp.float32) + db_ref[...]


def _select_config():
    """Per-generation (batch tile, scoped-VMEM limit) for the conv kernel."""
    kind = ""
    try:
        kind = jax.devices()[0].device_kind.lower()
    except Exception:
        pass
    if "v7" in kind or "7x" in kind:           # v7x: 64 MiB VMEM per TensorCore
        return 24, 44 << 20
    big_vmem = ("v5" in kind) or ("v6" in kind)
    if not big_vmem:
        try:
            big_vmem = pltpu.get_tpu_info().vmem_capacity_bytes >= (100 << 20)
        except Exception:
            pass
    if big_vmem:                               # v5e / v6e: 128 MiB physical VMEM
        return 48, 100 << 20
    return 24, 44 << 20                        # unknown: conservative


def mlp_forward(x, params, *, tb=None):
    (s_in, t_in, conv_w, conv_b,
     bs1, bt1, w1, b1, bs2, bt2, w2, b2, dw, db) = params

    B = x.shape[0]
    tb_auto, vmem_limit = _select_config()
    if tb is None:
        tb = tb_auto
        if B >= 16:                            # keep >= 2 grid steps (v7x dual TC)
            tb = min(tb, (B + 1) // 2)
    tb = max(1, min(tb, B))
    grid_b = pl.cdiv(B, tb)                    # partial last tile: Pallas masks it

    # Fold eval-mode input BN into the conv matmul (tiny host-side glue):
    #   (s*x + t) @ W + b = s*(x @ W) + (t * colsum(W) + b)
    bias2 = t_in * jnp.sum(conv_w, axis=0)[None, :] + conv_b   # (256, 10)
    cb = jnp.concatenate([bias2, s_in], axis=1)                # (256, 11) packed
    cw = conv_w.astype(jnp.bfloat16)                           # 12 KB; negligible

    # Free reshape (collapses leading dims only); x stays f32 in HBM.
    x2 = x.reshape(B * C_IN, W_IN)

    def full(shape):
        n = len(shape)
        return pl.BlockSpec(shape, lambda b: (0,) * n)

    pooled = pl.pallas_call(
        conv_pool_kernel,
        out_shape=jax.ShapeDtypeStruct((B, EMB), jnp.float32),
        grid_spec=pltpu.PrefetchScalarGridSpec(
            num_scalar_prefetch=0,
            grid=(grid_b,),
            in_specs=[
                pl.BlockSpec((tb * C_IN, W_IN), lambda b: (b, 0)),   # x (f32)
                full((C_IN, EMB + 1)),                               # bias|scale pack
                full((W_IN, EMB)),                                   # conv W (bf16)
            ],
            out_specs=pl.BlockSpec((tb, EMB), lambda b: (b, 0)),
        ),
        compiler_params=pltpu.CompilerParams(
            dimension_semantics=("parallel",),
            vmem_limit_bytes=vmem_limit),
    )(x2, cb, cw)

    # MLP head: 3 linear_blocks + residual + decoder over pooled (B, 10).
    tbh = min(B, 1024)
    grid_h = pl.cdiv(B, tbh)
    out = pl.pallas_call(
        head_kernel,
        out_shape=jax.ShapeDtypeStruct((B, CLASSES), jnp.float32),
        grid_spec=pltpu.PrefetchScalarGridSpec(
            num_scalar_prefetch=0,
            grid=(grid_h,),
            in_specs=[
                pl.BlockSpec((tbh, EMB), lambda b: (b, 0)),          # pooled h
                full((N_BLOCKS, 1, EMB)), full((N_BLOCKS, 1, EMB)),  # BN1 scale/shift
                full((N_BLOCKS, EMB, HID)), full((N_BLOCKS, 1, HID)),  # Linear1 W/b
                full((N_BLOCKS, 1, HID)), full((N_BLOCKS, 1, HID)),  # BN2 scale/shift
                full((N_BLOCKS, HID, EMB)), full((N_BLOCKS, 1, EMB)),  # Linear2 W/b
                full((EMB, CLASSES)), full((1, CLASSES)),            # decoder W/b
            ],
            out_specs=pl.BlockSpec((tbh, CLASSES), lambda b: (b, 0)),
        ),
        compiler_params=pltpu.CompilerParams(
            dimension_semantics=("parallel",)),
    )(pooled, bs1, bt1, w1, b1, bs2, bt2, w2, b2, dw, db)
    return out


def bn_eval_affine(gamma, beta, rmean, rvar):
    """Fold eval-mode BatchNorm into scale/shift (plain-JAX glue)."""
    scale = gamma / jnp.sqrt(rvar + BN_EPS)
    shift = beta - rmean * scale
    return scale, shift


def init_params(key):
    ks = jax.random.split(key, 16)

    # ---- input IC: BatchNorm1d(256), PyTorch defaults ----
    s_in, t_in = bn_eval_affine(jnp.ones((C_IN,), jnp.float32),
                                jnp.zeros((C_IN,), jnp.float32),
                                jnp.zeros((C_IN,), jnp.float32),
                                jnp.ones((C_IN,), jnp.float32))

    # ---- Conv2d(1, 10, (1,300)) reinterpreted as (300, 10) matmul ----
    conv_w = jax.random.normal(ks[0], (W_IN, EMB), jnp.float32) * 0.05
    conv_b = jax.random.normal(ks[1], (1, EMB), jnp.float32) * 0.05

    # ---- 3 identical linear_blocks (stacked along axis 0) ----
    bs1, bt1, w1s, b1s, bs2, bt2, w2s, b2s = [], [], [], [], [], [], [], []
    for i in range(N_BLOCKS):
        kk = jax.random.split(ks[2 + i], 4)
        s1, t1 = bn_eval_affine(jnp.ones((EMB,)), jnp.zeros((EMB,)),
                                jnp.zeros((EMB,)), jnp.ones((EMB,)))
        s2, t2 = bn_eval_affine(jnp.ones((HID,)), jnp.zeros((HID,)),
                                jnp.zeros((HID,)), jnp.ones((HID,)))
        bs1.append(s1[None, :]); bt1.append(t1[None, :])
        bs2.append(s2[None, :]); bt2.append(t2[None, :])
        w1s.append(jax.random.normal(kk[0], (EMB, HID), jnp.float32) * 0.2)
        b1s.append(jax.random.normal(kk[1], (1, HID), jnp.float32) * 0.1)
        w2s.append(jax.random.normal(kk[2], (HID, EMB), jnp.float32) * 0.2)
        b2s.append(jax.random.normal(kk[3], (1, EMB), jnp.float32) * 0.1)
    stack = lambda xs: jnp.stack(xs, axis=0)

    # ---- decoder Linear(10, 2) ----
    dec_w = jax.random.normal(ks[10], (EMB, CLASSES), jnp.float32) * 0.2
    dec_b = jax.random.normal(ks[11], (1, CLASSES), jnp.float32) * 0.1

    return (s_in[:, None], t_in[:, None], conv_w, conv_b,
            stack(bs1), stack(bt1), stack(w1s), stack(b1s),
            stack(bs2), stack(bt2), stack(w2s), stack(b2s),
            dec_w, dec_b)


def mlp_reference(x, params):
    """Pure-JAX f32 reference for sanity checking."""
    (s_in, t_in, cw, cb, bs1, bt1, w1, b1, bs2, bt2, w2, b2, dw, db) = params
    xn = x * s_in[None] + t_in[None]                       # (B, 256, 300)
    y = jnp.maximum(jnp.einsum('bcw,we->bce', xn, cw) + cb[None], 0.0)
    h = jnp.mean(y, axis=1)                                # (B, 10)
    h_org = h
    for blk in range(N_BLOCKS):
        hb = h * bs1[blk] + bt1[blk]
        z = jnp.maximum(hb @ w1[blk] + b1[blk], 0.0)
        zb = z * bs2[blk] + bt2[blk]
        h = jnp.maximum(zb @ w2[blk] + b2[blk], 0.0)
    h = h + h_org
    return h @ dw + db


if __name__ == "__main__":
    key = jax.random.PRNGKey(0)
    kx, kx2, kp = jax.random.split(key, 3)
    params = init_params(kp)

    # Small test: B=2 (auto tile; blocks == full dims).
    B = 2
    x = jax.random.normal(kx, (B, C_IN, W_IN), jnp.float32)
    out = jax.block_until_ready(mlp_forward(x, params))
    ref = mlp_reference(x, params)
    assert out.shape == (B, CLASSES)
    # Tolerance accounts for the in-kernel bf16 cast of x (f32 MXU accumulation).
    assert jnp.allclose(out, ref, rtol=2e-2, atol=2e-2), (out, ref)

    # Exercise batch tiling with a partial last tile (grid=2, B % tb != 0)
    # without any wrapper-side padding copy.
    B2 = 6
    x2 = jax.random.normal(kx2, (B2, C_IN, W_IN), jnp.float32)
    out2 = jax.block_until_ready(mlp_forward(x2, params, tb=4))
    ref2 = mlp_reference(x2, params)
    assert out2.shape == (B2, CLASSES)
    assert jnp.allclose(out2, ref2, rtol=2e-2, atol=2e-2), (out2, ref2)

    print("KERNEL_OK")
</pallas_src>

<mosaic_0001>
module attributes {stable_mosaic.version = 11 : i64} {
  func.func @conv_pool_kernel(%arg0: i32, %arg1: memref<512x300xf32, #tpu.memory_space<vmem>>, %arg2: memref<256x11xf32, #tpu.memory_space<vmem>>, %arg3: memref<300x10xbf16, #tpu.memory_space<vmem>>, %arg4: memref<2x10xf32, #tpu.memory_space<vmem>>) attributes {dimension_semantics = [#tpu.dimension_semantics<parallel>], iteration_bounds = array<i64: 1>, scalar_prefetch = 0 : i64, scratch_operands = 0 : i64, tpu.core_type = #tpu.core_type<tc>, window_params = [{transform_indices = @transform_0, window_bounds = array<i64: 512, 300>}, {pipeline_mode = #tpu.pipeline_mode<synchronous>, transform_indices = @transform_1, window_bounds = array<i64: 256, 11>}, {pipeline_mode = #tpu.pipeline_mode<synchronous>, transform_indices = @transform_2, window_bounds = array<i64: 300, 10>}, {transform_indices = @transform_3, window_bounds = array<i64: 2, 10>}]} {
    %c0 = arith.constant 0 : index
    %c0_0 = arith.constant 0 : index
    %0 = vector.load %arg1[%c0, %c0_0] : memref<512x300xf32, #tpu.memory_space<vmem>>, vector<512x300xf32>
    %1 = arith.truncf %0 : vector<512x300xf32> to vector<512x300xbf16>
    %c0_1 = arith.constant 0 : index
    %c0_2 = arith.constant 0 : index
    %2 = vector.load %arg3[%c0_1, %c0_2] : memref<300x10xbf16, #tpu.memory_space<vmem>>, vector<300x10xbf16>
    %cst = arith.constant dense<0.000000e+00> : vector<512x10xf32>
    %3 = tpu.matmul %1, %2, %cst {dimension_numbers = #tpu.dot_dimension_numbers<[1], [0], [0], [1], [0, 0, 1, 1], [], []>} : vector<512x300xbf16>, vector<300x10xbf16>, vector<512x10xf32> -> vector<512x10xf32>
    %c0_3 = arith.constant 0 : index
    %c0_4 = arith.constant 0 : index
    %4 = vector.load %arg2[%c0_3, %c0_4] : memref<256x11xf32, #tpu.memory_space<vmem>>, vector<256x11xf32>
    %5 = vector.extract_strided_slice %4 {offsets = [0, 10], sizes = [256, 1], strides = [1, 1]} : vector<256x11xf32> to vector<256x1xf32>
    %6 = vector.extract_strided_slice %4 {offsets = [0, 0], sizes = [256, 10], strides = [1, 1]} : vector<256x11xf32> to vector<256x10xf32>
    %7 = vector.shape_cast %3 : vector<512x10xf32> to vector<2x256x10xf32>
    %8 = vector.shape_cast %5 : vector<256x1xf32> to vector<1x256x1xf32>
    %9 = vector.broadcast %8 : vector<1x256x1xf32> to vector<2x256x10xf32>
    %10 = arith.mulf %7, %9 : vector<2x256x10xf32>
    %11 = vector.shape_cast %6 : vector<256x10xf32> to vector<1x256x10xf32>
    %12 = vector.broadcast %11 : vector<1x256x10xf32> to vector<2x256x10xf32>
    %13 = arith.addf %10, %12 : vector<2x256x10xf32>
    %cst_5 = arith.constant 0.000000e+00 : f32
    %14 = vector.broadcast %cst_5 : f32 to vector<2x256x10xf32>
    %15 = arith.maximumf %13, %14 : vector<2x256x10xf32>
    %cst_6 = arith.constant dense<0.000000e+00> : vector<2x10xf32>
    %16 = vector.multi_reduction <add>, %15, %cst_6 [1] : vector<2x256x10xf32> to vector<2x10xf32>
    %cst_7 = arith.constant 2.560000e+02 : f32
    %17 = vector.broadcast %cst_7 : f32 to vector<2x10xf32>
    %18 = arith.divf %16, %17 : vector<2x10xf32>
    %c0_8 = arith.constant 0 : index
    %c0_9 = arith.constant 0 : index
    %19 = vector.load %arg4[%c0_8, %c0_9] : memref<2x10xf32, #tpu.memory_space<vmem>>, vector<2x10xf32>
    tpu.vector_store %arg4[%c0_8, %c0_9], %18 {strides = array<i32>} : memref<2x10xf32, #tpu.memory_space<vmem>>, vector<2x10xf32>,
    return
  }
  func.func @transform_0(%arg0: i32) -> (i32, i32) {
    %c0_i32 = arith.constant 0 : i32
    %c0_i32_0 = arith.constant 0 : i32
    return %arg0, %c0_i32 : i32, i32
  }
  func.func @transform_1(%arg0: i32) -> (i32, i32) {
    %c0_i32 = arith.constant 0 : i32
    %c0_i32_0 = arith.constant 0 : i32
    %c0_i32_1 = arith.constant 0 : i32
    return %c0_i32, %c0_i32_0 : i32, i32
  }
  func.func @transform_2(%arg0: i32) -> (i32, i32) {
    %c0_i32 = arith.constant 0 : i32
    %c0_i32_0 = arith.constant 0 : i32
    %c0_i32_1 = arith.constant 0 : i32
    return %c0_i32, %c0_i32_0 : i32, i32
  }
  func.func @transform_3(%arg0: i32) -> (i32, i32) {
    %c0_i32 = arith.constant 0 : i32
    %c0_i32_0 = arith.constant 0 : i32
    return %arg0, %c0_i32 : i32, i32
  }
}

</mosaic_0001>

<bundles_post_ra>
// kernel: tpu_custom_call.1
= control target key start
LH: loop header
LB: loop body
LE: loop exit
PB: predicated region body
PF: predicated region fallthrough
CT: control target
= control target key end

     0   :  { %v1950_v1 = vmov 0   ;;  %s3384_s0 = inlined_call_operand.vmem [shape: f32[512,300], index: 0, kind: input, shape index: {}]   ;;  %s3385_s1 = inlined_call_operand.vmem [shape: f32[256,11], index: 1, kind: input, shape index: {}]   ;;  %s3386_s2 = inlined_call_operand.vmem [shape: bf16[300,10], index: 2, kind: input, shape index: {}]   ;;  %s3387_s3 = inlined_call_operand.hbm [shape: f32[2,10], index: 3, kind: output, shape index: {}]  }
   0x1   :  { %v1875_v0 = vld [vmem:[%s3386_s2] sm:$0xff]   ;;  %556 = vmatprep.subr.bf16.mxu0 %v1950_v1  ;;  %1837 = vmatprep.subr.bf16.mxu1 %v1950_v1  ;;  %v1876_v2 = vld [vmem:[%s3386_s2 + $0x8] sm:$0xff]   ;;  %v1877_v3 = vld [vmem:[%s3386_s2 + $0x10] sm:$0xff]  }
   0x2   :  { %557 = vmatpush1.bf16.msra.mxu0 %v1875_v0  ;;  %1853 = vmatpush1.bf16.msra.mxu1 %v1875_v0  ;;  %v1878_v4 = vld [vmem:[%s3386_s2 + $0x18] sm:$0xff]   ;;  %v1879_v5 = vld [vmem:[%s3386_s2 + $0x20] sm:$0xff]   ;;  %v17_v6 = vld [vmem:[%s3384_s0 + $0x8] sm:$0xff] }
   0x3   :  { %558 = vmatprep.subr.bf16.mxu0 %v1950_v1  ;;  %1838 = vmatprep.subr.bf16.mxu1 %v1950_v1  ;;  %v20_v7 = vld [vmem:[%s3384_s0 + $0x20] sm:$0xff]  ;;  %v161_v8 = vld [vmem:[%s3384_s0 + $0x488] sm:$0xff]  ;;  %v1881_v13 = vld [vmem:[%s3386_s2 + $0x30] sm:$0xff]  }
   0x4   :  { %v209_v9 = vpack.c.bf16 %v20_v7, %v17_v6  ;;  %v164_v10 = vld [vmem:[%s3384_s0 + $0x4a0] sm:$0xff]  ;;  %v1880_v11 = vld [vmem:[%s3386_s2 + $0x28] sm:$0xff]   ;;  %v1882_v14 = vld [vmem:[%s3386_s2 + $0x38] sm:$0xff]  }
   0x5   :  { %v281_v12 = vpack.c.bf16 %v164_v10, %v161_v8  ;;  %v1883_v15 = vld [vmem:[%s3386_s2 + $0x40] sm:$0xff]   ;;  %v1884_v16 = vld [vmem:[%s3386_s2 + $0x48] sm:$0xff]   ;;  %v1885_v17 = vld [vmem:[%s3386_s2 + $0x50] sm:$0xff]  }
   0x6   :  { %559 = vmatpush1.bf16.msra.mxu0 %v1876_v2  ;;  %1854 = vmatpush1.bf16.msra.mxu1 %v1876_v2  ;;  %v1886_v18 = vld [vmem:[%s3386_s2 + $0x58] sm:$0xff]   ;;  %v1887_v19 = vld [vmem:[%s3386_s2 + $0x60] sm:$0xff]   ;;  %v1888_v20 = vld [vmem:[%s3386_s2 + $0x68] sm:$0xff]  }
   0x7   :  { %560 = vmatprep.subr.bf16.mxu0 %v1950_v1  ;;  %1839 = vmatprep.subr.bf16.mxu1 %v1950_v1  ;;  %v1889_v21 = vld [vmem:[%s3386_s2 + $0x70] sm:$0xff]   ;;  %v1890_v22 = vld [vmem:[%s3386_s2 + $0x78] sm:$0xff]   ;;  %v16_v23 = vld [vmem:[%s3384_s0] sm:$0xff] }
   0x8   :  { %588 = vmatprep.mubr.bf16.mxu0 %v209_v9  ;;  %780 = vmatprep.mubr.bf16.mxu1 %v281_v12  ;;  %v19_v24 = vld [vmem:[%s3384_s0 + $0x18] sm:$0xff]  ;;  %v160_v25 = vld [vmem:[%s3384_s0 + $0x480] sm:$0xff]  ;;  %v26_v28 = vld [vmem:[%s3384_s0 + $0x50] sm:$0xff] }
   0x9   :  { %v163_v26 = vld [vmem:[%s3384_s0 + $0x498] sm:$0xff]  ;;  %v170_v30 = vld [vmem:[%s3384_s0 + $0x4d0] sm:$0xff]  ;;  %v1891_v31 = vld [vmem:[%s3386_s2 + $0x80] sm:$0xff]   ;;  %v208_v32 = vpack.c.bf16 %v19_v24, %v16_v23 }
   0xa   :  { %561 = vmatpush1.bf16.msra.mxu0 %v1877_v3  ;;  %1855 = vmatpush1.bf16.msra.mxu1 %v1877_v3  ;;  %v23_v27 = vld [vmem:[%s3384_s0 + $0x38] sm:$0xff]  ;;  %v280_v33 = vpack.c.bf16 %v163_v26, %v160_v25  ;;  %v1892_v36 = vld [vmem:[%s3386_s2 + $0x88] sm:$0xff]  }
   0xb   :  { %562 = vmatprep.subr.bf16.mxu0 %v1950_v1  ;;  %1840 = vmatprep.subr.bf16.mxu1 %v1950_v1  ;;  %v167_v29 = vld [vmem:[%s3384_s0 + $0x4b8] sm:$0xff]  ;;  %v212_v34 = vpack.c.bf16 %v26_v28, %v23_v27 }
   0xc   :  { %v284_v35 = vpack.c.bf16 %v170_v30, %v167_v29 }
   0xe   :  { %563 = vmatpush1.bf16.msra.mxu0 %v1878_v4  ;;  %1856 = vmatpush1.bf16.msra.mxu1 %v1878_v4 }
   0xf   :  { %564 = vmatprep.subr.bf16.mxu0 %v1950_v1  ;;  %1841 = vmatprep.subr.bf16.mxu1 %v1950_v1 }
  0x12   :  { %565 = vmatpush1.bf16.msra.mxu0 %v1879_v5  ;;  %1857 = vmatpush1.bf16.msra.mxu1 %v1879_v5 }
  0x13   :  { %566 = vmatprep.subr.bf16.mxu0 %v1950_v1  ;;  %1842 = vmatprep.subr.bf16.mxu1 %v1950_v1 }
  0x16   :  { %567 = vmatpush1.bf16.msra.mxu0 %v1880_v11  ;;  %1858 = vmatpush1.bf16.msra.mxu1 %v1880_v11 }
  0x17   :  { %568 = vmatprep.subr.bf16.mxu0 %v1950_v1  ;;  %1843 = vmatprep.subr.bf16.mxu1 %v1950_v1 }
  0x1a   :  { %569 = vmatpush1.bf16.msra.mxu0 %v1881_v13  ;;  %1859 = vmatpush1.bf16.msra.mxu1 %v1881_v13 }
  0x1b   :  { %570 = vmatprep.subr.bf16.mxu0 %v1950_v1  ;;  %1844 = vmatprep.subr.bf16.mxu1 %v1950_v1 }
  0x1e   :  { %571 = vmatpush1.bf16.msra.mxu0 %v1882_v14  ;;  %1860 = vmatpush1.bf16.msra.mxu1 %v1882_v14 }
  0x1f   :  { %572 = vmatprep.subr.bf16.mxu0 %v1950_v1  ;;  %1845 = vmatprep.subr.bf16.mxu1 %v1950_v1 }
  0x22   :  { %573 = vmatpush1.bf16.msra.mxu0 %v1883_v15  ;;  %1861 = vmatpush1.bf16.msra.mxu1 %v1883_v15 }
  0x23   :  { %574 = vmatprep.subr.bf16.mxu0 %v1950_v1  ;;  %1846 = vmatprep.subr.bf16.mxu1 %v1950_v1 }
  0x26   :  { %575 = vmatpush1.bf16.msra.mxu0 %v1884_v16  ;;  %1862 = vmatpush1.bf16.msra.mxu1 %v1884_v16 }
  0x27   :  { %576 = vmatprep.subr.bf16.mxu0 %v1950_v1  ;;  %1847 = vmatprep.subr.bf16.mxu1 %v1950_v1 }
  0x2a   :  { %577 = vmatpush1.bf16.msra.mxu0 %v1885_v17  ;;  %1863 = vmatpush1.bf16.msra.mxu1 %v1885_v17 }
  0x2b   :  { %578 = vmatprep.subr.bf16.mxu0 %v1950_v1  ;;  %1848 = vmatprep.subr.bf16.mxu1 %v1950_v1 }
  0x2e   :  { %579 = vmatpush1.bf16.msra.mxu0 %v1886_v18  ;;  %1864 = vmatpush1.bf16.msra.mxu1 %v1886_v18 }
  0x2f   :  { %580 = vmatprep.subr.bf16.mxu0 %v1950_v1  ;;  %1849 = vmatprep.subr.bf16.mxu1 %v1950_v1 }
  0x32   :  { %581 = vmatpush1.bf16.msra.mxu0 %v1887_v19  ;;  %1865 = vmatpush1.bf16.msra.mxu1 %v1887_v19 }
  0x33   :  { %582 = vmatprep.subr.bf16.mxu0 %v1950_v1  ;;  %1850 = vmatprep.subr.bf16.mxu1 %v1950_v1 }
  0x36   :  { %583 = vmatpush1.bf16.msra.mxu0 %v1888_v20  ;;  %1866 = vmatpush1.bf16.msra.mxu1 %v1888_v20 }
  0x37   :  { %584 = vmatprep.subr.bf16.mxu0 %v1950_v1  ;;  %1851 = vmatprep.subr.bf16.mxu1 %v1950_v1 }
  0x3a   :  { %585 = vmatpush1.bf16.msra.mxu0 %v1889_v21  ;;  %1867 = vmatpush1.bf16.msra.mxu1 %v1889_v21 }
  0x3b   :  { %586 = vmatprep.subr.bf16.mxu0 %v1950_v1  ;;  %1852 = vmatprep.subr.bf16.mxu1 %v1950_v1 }
  0x3e   :  { %587 = vmatpush1.bf16.msra.mxu0 %v1890_v22  ;;  %1868 = vmatpush1.bf16.msra.mxu1 %v1890_v22 }
  0x3f   :  { %1767 = vmatprep.subr.bf16.mxu1 %v1891_v31 }
  0x40   :  { %8 = vsyncpa [#allocation3], 0  ;;  %v22_v37 = vld [vmem:[%s3384_s0 + $0x30] sm:$0xff]  ;;  %v25_v38 = vld [vmem:[%s3384_s0 + $0x48] sm:$0xff]  ;;  %vm552_vm0 = vcmask 1045504   ;;  %v1951_v9 = vmov 10  }
  0x41   :  { %589 = vmatmul.mubr.bf16.vlgmr.msra.gmra.mrb[0].mxu0 %v208_v32  ;;  %781 = vmatmul.mubr.bf16.vlgmr.msra.gmra.mrb[0].mxu1 %v280_v33  ;;  %v166_v39 = vld [vmem:[%s3384_s0 + $0x4b0] sm:$0xff]  ;;  %v169_v40 = vld [vmem:[%s3384_s0 + $0x4c8] sm:$0xff]  ;;  %v32_v42 = vld [vmem:[%s3384_s0 + $0x80] sm:$0xff]  ;;  %v211_v46 = vpack.c.bf16 %v25_v38, %v22_v37  ;;  %vm455_vm1 = vcmask 359424   ;;  %vm1518_vm2 = vcmask 80896   ;;  %vm1662_vm3 = vcmask 1041409  }
  0x42   :  { %596 = vmatprep.mubr.bf16.mxu0 %v212_v34  ;;  %788 = vmatprep.mubr.bf16.mxu1 %v284_v35  ;;  %v29_v41 = vld [vmem:[%s3384_s0 + $0x68] sm:$0xff]  ;;  %v176_v44 = vld [vmem:[%s3384_s0 + $0x500] sm:$0xff]  ;;  %v1893_v45 = vld [vmem:[%s3386_s2 + $0x90] sm:$0x3f]   ;;  %v283_v47 = vpack.c.bf16 %v169_v40, %v166_v39  ;;  %vm1665_vm4 = vcmask 74752  }
  0x43   :  { %v173_v43 = vld [vmem:[%s3384_s0 + $0x4e8] sm:$0xff]  ;;  %1768 = vmatpush3.bf16.msra.mxu1 %v1891_v31  ;;  %v215_v48 = vpack.c.bf16 %v32_v42, %v29_v41  ;;  %v554_v50 = vsel %vm552_vm0, %v1893_v45, 0  ;;  %v28_v51 = vld [vmem:[%s3384_s0 + $0x60] sm:$0xff]  ;;  %v31_v52 = vld [vmem:[%s3384_s0 + $0x78] sm:$0xff]  ;;  %1873 = vset.pattern.permute.xlu0 %v1951_v9 }
  0x44   :  { %1769 = vmatprep.subr.bf16.mxu1 %v1892_v36  ;;  %v287_v49 = vpack.c.bf16 %v176_v44, %v173_v43  ;;  %v172_v53 = vld [vmem:[%s3384_s0 + $0x4e0] sm:$0xff]  ;;  %v175_v54 = vld [vmem:[%s3384_s0 + $0x4f8] sm:$0xff]  ;;  %v38_v56 = vld [vmem:[%s3384_s0 + $0xb0] sm:$0xff]  ;;  %v214_v59 = vpack.c.bf16 %v31_v52, %v28_v51  ;;  %1874 = vset.pattern.permute.xlu1 %v1951_v9 }
  0x45   :  { %v35_v55 = vld [vmem:[%s3384_s0 + $0x98] sm:$0xff]  ;;  %v182_v58 = vld [vmem:[%s3384_s0 + $0x530] sm:$0xff]  ;;  %v286_v60 = vpack.c.bf16 %v175_v54, %v172_v53  ;;  %v37_v0 = vld [vmem:[%s3384_s0 + $0xa8] sm:$0xff] }
  0x46   :  { %v179_v57 = vld [vmem:[%s3384_s0 + $0x518] sm:$0xff]  ;;  %v218_v61 = vpack.c.bf16 %v38_v56, %v35_v55  ;;  %v34_v63 = vld [vmem:[%s3384_s0 + $0x90] sm:$0xff]  ;;  %v2155_v1 = vld [vmem:[%s3385_s1] sm:$0xff] }
  0x47   :  { %1770 = vmatpush3.bf16.msra.mxu1 %v1892_v36  ;;  %v290_v62 = vpack.c.bf16 %v182_v58, %v179_v57  ;;  %v2160_v2 = vld [vmem:[%s3385_s1 + $0x10] sm:$0xff]  ;;  %v181_v4 = vld [vmem:[%s3384_s0 + $0x528] sm:$0xff]  ;;  %v44_v6 = vld [vmem:[%s3384_s0 + $0xe0] sm:$0xff]  ;;  %1168 = vperm.xlu0 %1873, %v2155_v1   ;;  %v217_v10 = vpack.c.bf16 %v37_v0, %v34_v63 }
  0x48   :  { %1869 = vmatprep.subr.msk.bf16.mxu1 %vm552_vm0, %v1893_v45  ;;  %v178_v3 = vld [vmem:[%s3384_s0 + $0x510] sm:$0xff]  ;;  %v41_v5 = vld [vmem:[%s3384_s0 + $0xc8] sm:$0xff]  ;;  %v188_v8 = vld [vmem:[%s3384_s0 + $0x560] sm:$0xff]  ;;  %1178 = vperm.xlu1 %1874, %v2160_v2  }
  0x49   :  { %597 = vmatmul.mubr.bf16.gmra.mrb[4].mxu0 %v211_v46  ;;  %789 = vmatmul.mubr.bf16.gmra.mrb[4].mxu1 %v283_v47  ;;  %v185_v7 = vld [vmem:[%s3384_s0 + $0x548] sm:$0xff]  ;;  %v289_v11 = vpack.c.bf16 %v181_v4, %v178_v3  ;;  %v2190_v13 = vld [vmem:[%s3385_s1 + $0x18] sm:$0xff]  ;;  %v221_v14 = vpack.c.bf16 %v44_v6, %v41_v5  ;;  %v40_v16 = vld [vmem:[%s3384_s0 + $0xc0] sm:$0xff] }
  0x4a   :  { %604 = vmatprep.mubr.bf16.mxu0 %v215_v48  ;;  %796 = vmatprep.mubr.bf16.mxu1 %v287_v49  ;;  %v2185_v12 = vld [vmem:[%s3385_s1 + $0x8] sm:$0xff]  ;;  %v293_v15 = vpack.c.bf16 %v188_v8, %v185_v7  ;;  %v43_v17 = vld [vmem:[%s3384_s0 + $0xd8] sm:$0xff]  ;;  %v2203_v18 = vld [vmem:[%s3385_s1 + $0x20] sm:$0xff] }
  0x4b   :  { %1772 = vmatpush3.bf16.msra.mxu1 %v554_v50  ;;  %1173 = vperm.xlu0 %1873, %v2185_v12   ;;  %v2208_v19 = vld [vmem:[%s3385_s1 + $0x28] sm:$0xff]  ;;  %v184_v20 = vld [vmem:[%s3384_s0 + $0x540] sm:$0xff]  ;;  %v187_v21 = vld [vmem:[%s3384_s0 + $0x558] sm:$0xff]  ;;  %v220_v26 = vpack.c.bf16 %v43_v17, %v40_v16 }
  0x4c   :  { %1183 = vperm.xlu1 %1874, %v2190_v13   ;;  %v47_v22 = vld [vmem:[%s3384_s0 + $0xf8] sm:$0xff]  ;;  %v50_v23 = vld [vmem:[%s3384_s0 + $0x110] sm:$0xff]  ;;  %v292_v27 = vpack.c.bf16 %v187_v21, %v184_v20  ;;  %v49_v33 = vld [vmem:[%s3384_s0 + $0x108] sm:$0xff] }
  0x4d   :  { %v191_v24 = vld [vmem:[%s3384_s0 + $0x578] sm:$0xff]  ;;  %v194_v25 = vld [vmem:[%s3384_s0 + $0x590] sm:$0xff]  ;;  %v224_v30 = vpack.c.bf16 %v50_v23, %v47_v22  ;;  %v2251_v34 = vld [vmem:[%s3385_s1 + $0x40] sm:$0xff] }
  0x4e   :  { %v2233_v28 = vld [vmem:[%s3385_s1 + $0x30] sm:$0xff]  ;;  %v2238_v29 = vld [vmem:[%s3385_s1 + $0x38] sm:$0xff]  ;;  %v296_v31 = vpack.c.bf16 %v194_v25, %v191_v24  ;;  %v1143_v35 = vld [vmem:[%s3385_s1 + $0x48] sm:$0xff] }
  0x4f   :  { %1188 = vperm.xlu0 %1873, %v2203_v18   ;;  %v46_v32 = vld [vmem:[%s3384_s0 + $0xf0] sm:$0xff]  ;;  %v193_v37 = vld [vmem:[%s3384_s0 + $0x588] sm:$0xff]  ;;  %v56_v39 = vld [vmem:[%s3384_s0 + $0x140] sm:$0xff] }
  0x50   :  { %1193 = vperm.xlu1 %1874, %v2208_v19   ;;  %v190_v36 = vld [vmem:[%s3384_s0 + $0x570] sm:$0xff]  ;;  %v53_v38 = vld [vmem:[%s3384_s0 + $0x128] sm:$0xff]  ;;  %v200_v41 = vld [vmem:[%s3384_s0 + $0x5c0] sm:$0xff]  ;;  %v223_v42 = vpack.c.bf16 %v49_v33, %v46_v32 }
  0x51   :  { %605 = vmatmul.mubr.bf16.gmra.mrb[8].mxu0 %v214_v59  ;;  %797 = vmatmul.mubr.bf16.gmra.mrb[8].mxu1 %v286_v60  ;;  %v197_v40 = vld [vmem:[%s3384_s0 + $0x5a8] sm:$0xff]  ;;  %v295_v43 = vpack.c.bf16 %v193_v37, %v190_v36  ;;  %v2278_v44 = vld [vmem:[%s3385_s1 + $0x50] sm:$0xff]  ;;  %v2283_v45 = vld [vmem:[%s3385_s1 + $0x58] sm:$0xff]  ;;  %v227_v46 = vpack.c.bf16 %v56_v39, %v53_v38 }
  0x52   :  { %612 = vmatprep.mubr.bf16.mxu0 %v218_v61  ;;  %804 = vmatprep.mubr.bf16.mxu1 %v290_v62  ;;  %v299_v47 = vpack.c.bf16 %v200_v41, %v197_v40  ;;  %v52_v48 = vld [vmem:[%s3384_s0 + $0x120] sm:$0xff]  ;;  %v55_v49 = vld [vmem:[%s3384_s0 + $0x138] sm:$0xff]  ;;  %v1147_v51 = vld [vmem:[%s3385_s1 + $0x68] sm:$0xff] }
  0x53   :  { %1198 = vperm.xlu0 %1873, %v2233_v28   ;;  %v1146_v50 = vld [vmem:[%s3385_s1 + $0x60] sm:$0xff]  ;;  %v199_v53 = vld [vmem:[%s3384_s0 + $0x5b8] sm:$0xff]  ;;  %v62_v55 = vld [vmem:[%s3384_s0 + $0x170] sm:$0xff]  ;;  %v226_v58 = vpack.c.bf16 %v55_v49, %v52_v48 }
  0x54   :  { %1203 = vperm.xlu1 %1874, %v2238_v29   ;;  %v196_v52 = vld [vmem:[%s3384_s0 + $0x5a0] sm:$0xff]  ;;  %v59_v54 = vld [vmem:[%s3384_s0 + $0x158] sm:$0xff]  ;;  %v206_v57 = vld [vmem:[%s3384_s0 + $0x5f0] sm:$0xff] }
  0x55   :  { %v203_v56 = vld [vmem:[%s3384_s0 + $0x5d8] sm:$0xff]  ;;  %v298_v59 = vpack.c.bf16 %v199_v53, %v196_v52  ;;  %v2320_v60 = vld [vmem:[%s3385_s1 + $0x70] sm:$0xff]  ;;  %v230_v62 = vpack.c.bf16 %v62_v55, %v59_v54  ;;  %v61_v3 = vld [vmem:[%s3384_s0 + $0x168] sm:$0xff] }
  0x56   :  { %v2325_v61 = vld [vmem:[%s3385_s1 + $0x78] sm:$0xff]  ;;  %v302_v63 = vpack.c.bf16 %v206_v57, %v203_v56  ;;  %v58_v0 = vld [vmem:[%s3384_s0 + $0x150] sm:$0xff]  ;;  %v1150_v4 = vld [vmem:[%s3385_s1 + $0x80] sm:$0xff] }
  0x57   :  { %1208 = vperm.xlu0 %1873, %v2251_v34   ;;  %v1151_v5 = vld [vmem:[%s3385_s1 + $0x88] sm:$0xff]  ;;  %v202_v6 = vld [vmem:[%s3384_s0 + $0x5d0] sm:$0xff]  ;;  %v68_v9 = vld [vmem:[%s3384_s0 + $0x1a0] sm:$0xff] }
  0x58   :  { %1213 = vperm.xlu1 %1874, %v1143_v35   ;;  %v205_v7 = vld [vmem:[%s3384_s0 + $0x5e8] sm:$0xff]  ;;  %v1152_v16 = vld [vmem:[%s3385_s1 + $0x90] sm:$0xff]  ;;  %v1153_v17 = vld [vmem:[%s3385_s1 + $0x98] sm:$0xff] }
  0x59   :  { %613 = vmatmul.mubr.bf16.gmra.mrb[12].mxu0 %v217_v10  ;;  %805 = vmatmul.mubr.bf16.gmra.mrb[12].mxu1 %v289_v11  ;;  %v65_v8 = vld [vmem:[%s3384_s0 + $0x188] sm:$0xff]  ;;  %v18_v10 = vld [vmem:[%s3384_s0 + $0x10] sm:$0xff]  ;;  %v64_v22 = vld [vmem:[%s3384_s0 + $0x180] sm:$0xff] }
  0x5a   :  { %620 = vmatprep.mubr.bf16.mxu0 %v221_v14  ;;  %812 = vmatprep.mubr.bf16.mxu1 %v293_v15  ;;  %v21_v11 = vld [vmem:[%s3384_s0 + $0x28] sm:$0xff]  ;;  %v229_v14 = vpack.c.bf16 %v61_v3, %v58_v0  ;;  %v301_v15 = vpack.c.bf16 %v205_v7, %v202_v6  ;;  %v233_v20 = vpack.c.bf16 %v68_v9, %v65_v8  ;;  %v67_v23 = vld [vmem:[%s3384_s0 + $0x198] sm:$0xff]  ;;  %v1154_v24 = vld [vmem:[%s3385_s1 + $0xa0] sm:$0xff] }
  0x5b   :  { %1218 = vperm.xlu0 %1873, %v2278_v44   ;;  %v210_v21 = vpack.c.bf16 %v21_v11, %v18_v10  ;;  %v1155_v25 = vld [vmem:[%s3385_s1 + $0xa8] sm:$0xff]  ;;  %v30_v32 = vld [vmem:[%s3384_s0 + $0x70] sm:$0xff]  ;;  %v232_v35 = vpack.c.bf16 %v67_v23, %v64_v22  ;;  %v1157_v38 = vld [vmem:[%s3385_s1 + $0xb8] sm:$0xff] }
  0x5c   :  { %1223 = vperm.xlu1 %1874, %v2283_v45   ;;  %v33_v33 = vld [vmem:[%s3384_s0 + $0x88] sm:$0xff]  ;;  %v1156_v37 = vld [vmem:[%s3385_s1 + $0xb0] sm:$0xff]  ;;  %v39_v48 = vld [vmem:[%s3384_s0 + $0xb8] sm:$0xff] }
  0x5d   :  { %v216_v40 = vpack.c.bf16 %v33_v33, %v30_v32  ;;  %v70_v41 = vld [vmem:[%s3384_s0 + $0x1b0] sm:$0xff]  ;;  %v77_v49 = vld [vmem:[%s3384_s0 + $0x1e8] sm:$0xff]  ;;  %v1161_v56 = vld [vmem:[%s3385_s1 + $0xd8] sm:$0xff] }
  0x5e   :  { %v45_v52 = vld [vmem:[%s3384_s0 + $0xe8] sm:$0xff]  ;;  %v1160_v55 = vld [vmem:[%s3385_s1 + $0xd0] sm:$0xff]  ;;  %v48_v3 = vld [vmem:[%s3384_s0 + $0x100] sm:$0xff] }
  0x5f   :  { %1228 = vperm.xlu0 %1873, %v1146_v50   ;;  %v80_v50 = vld [vmem:[%s3384_s0 + $0x200] sm:$0xff]  ;;  %v1163_v0 = vld [vmem:[%s3385_s1 + $0xe8] sm:$0xff]  ;;  %v86_v6 = vld [vmem:[%s3384_s0 + $0x230] sm:$0xff] }
  0x60   :  { %1233 = vperm.xlu1 %1874, %v1147_v51   ;;  %v42_v51 = vld [vmem:[%s3384_s0 + $0xd0] sm:$0xff]  ;;  %v239_v57 = vpack.c.bf16 %v80_v50, %v77_v49  ;;  %v57_v8 = vld [vmem:[%s3384_s0 + $0x148] sm:$0xff]  ;;  %v63_v22 = vld [vmem:[%s3384_s0 + $0x178] sm:$0xff] }
  0x61   :  { %621 = vmatmul.mubr.bf16.gmra.mrb[16].mxu0 %v220_v26  ;;  %813 = vmatmul.mubr.bf16.gmra.mrb[16].mxu1 %v292_v27  ;;  %v24_v26 = vld [vmem:[%s3384_s0 + $0x40] sm:$0xff]  ;;  %v27_v27 = vld [vmem:[%s3384_s0 + $0x58] sm:$0xff]  ;;  %v54_v7 = vld [vmem:[%s3384_s0 + $0x130] sm:$0xff] }
  0x62   :  { %628 = vmatprep.mubr.bf16.mxu0 %v224_v30  ;;  %820 = vmatprep.mubr.bf16.mxu1 %v296_v31  ;;  %v71_v30 = vld [vmem:[%s3384_s0 + $0x1b8] sm:$0xff]  ;;  %v74_v31 = vld [vmem:[%s3384_s0 + $0x1d0] sm:$0xff]  ;;  %v213_v36 = vpack.c.bf16 %v27_v27, %v24_v26  ;;  %v89_v23 = vld [vmem:[%s3384_s0 + $0x248] sm:$0xff] }
  0x63   :  { %1238 = vperm.xlu0 %1873, %v2320_v60   ;;  %v236_v39 = vpack.c.bf16 %v74_v31, %v71_v30  ;;  %v1164_v11 = vld [vmem:[%s3385_s1 + $0xf0] sm:$0xff]  ;;  %v69_v26 = vld [vmem:[%s3384_s0 + $0x1a8] sm:$0xff]  ;;  %v88_v33 = vld [vmem:[%s3384_s0 + $0x240] sm:$0xff] }
  0x64   :  { %1243 = vperm.xlu1 %1874, %v2325_v61   ;;  %v97_v49 = vld [vmem:[%s3384_s0 + $0x288] sm:$0xff]  ;;  %v84_v50 = vld [vmem:[%s3384_s0 + $0x220] sm:$0xff] }
  0x67   :  { %1248 = vperm.xlu0 %1873, %v1150_v4   ;;  %v51_v4 = vld [vmem:[%s3384_s0 + $0x118] sm:$0xff] }
  0x68   :  { %1253 = vperm.xlu1 %1874, %v1151_v5   ;;  %v83_v5 = vld [vmem:[%s3384_s0 + $0x218] sm:$0xff]  ;;  %v225_v10 = vpack.c.bf16 %v51_v4, %v48_v3 }
  0x69   :  { %629 = vmatmul.mubr.bf16.gmra.mrb[20].mxu0 %v223_v42  ;;  %821 = vmatmul.mubr.bf16.gmra.mrb[20].mxu1 %v295_v43  ;;  %v73_v42 = vld [vmem:[%s3384_s0 + $0x1c8] sm:$0xff]  ;;  %v1158_v43 = vld [vmem:[%s3385_s1 + $0xc0] sm:$0xff]  ;;  %v99_v3 = vld [vmem:[%s3384_s0 + $0x298] sm:$0xff] }
  0x6a   :  { %636 = vmatprep.mubr.bf16.mxu0 %v227_v46  ;;  %828 = vmatprep.mubr.bf16.mxu1 %v299_v47  ;;  %v1159_v46 = vld [vmem:[%s3385_s1 + $0xc8] sm:$0xff]  ;;  %v36_v47 = vld [vmem:[%s3384_s0 + $0xa0] sm:$0xff]  ;;  %v235_v53 = vpack.c.bf16 %v73_v42, %v70_v41  ;;  %v107_v4 = vld [vmem:[%s3384_s0 + $0x2d8] sm:$0xff] }
  0x6b   :  { %1258 = vperm.xlu0 %1873, %v1152_v16   ;;  %v219_v54 = vpack.c.bf16 %v39_v48, %v36_v47  ;;  %v228_v16 = vpack.c.bf16 %v57_v8, %v54_v7  ;;  %v81_v41 = vld [vmem:[%s3384_s0 + $0x208] sm:$0xff]  ;;  %v94_v48 = vld [vmem:[%s3384_s0 + $0x270] sm:$0xff] }
  0x6c   :  { %1263 = vperm.xlu1 %1874, %v1153_v17   ;;  %v82_v17 = vld [vmem:[%s3384_s0 + $0x210] sm:$0xff]  ;;  %v105_v7 = vld [vmem:[%s3384_s0 + $0x2c8] sm:$0xff] }
  0x6f   :  { %1268 = vperm.xlu0 %1873, %v1154_v24   ;;  %v92_v24 = vld [vmem:[%s3384_s0 + $0x260] sm:$0xff] }
  0x70   :  { %1273 = vperm.xlu1 %1874, %v1155_v25   ;;  %v66_v25 = vld [vmem:[%s3384_s0 + $0x190] sm:$0xff]  ;;  %v245_v31 = vpack.c.bf16 %v92_v24, %v89_v23  ;;  %v117_v23 = vld [vmem:[%s3384_s0 + $0x328] sm:$0xff] }
  0x71   :  { %637 = vmatmul.mubr.bf16.gmra.mrb[24].mxu0 %v226_v58  ;;  %829 = vmatmul.mubr.bf16.gmra.mrb[24].mxu1 %v298_v59  ;;  %v222_v58 = vpack.c.bf16 %v45_v52, %v42_v51  ;;  %v76_v59 = vld [vmem:[%s3384_s0 + $0x1e0] sm:$0xff]  ;;  %v234_v32 = vpack.c.bf16 %v69_v26, %v66_v25  ;;  %v87_v51 = vld [vmem:[%s3384_s0 + $0x238] sm:$0xff]  ;;  %v101_v52 = vld [vmem:[%s3384_s0 + $0x2a8] sm:$0xff] }
  0x72   :  { %644 = vmatprep.mubr.bf16.mxu0 %v230_v62  ;;  %836 = vmatprep.mubr.bf16.mxu1 %v302_v63  ;;  %v79_v62 = vld [vmem:[%s3384_s0 + $0x1f8] sm:$0xff]  ;;  %v1162_v63 = vld [vmem:[%s3385_s1 + $0xe0] sm:$0xff] }
  0x73   :  { %1278 = vperm.xlu0 %1873, %v1156_v37   ;;  %v238_v9 = vpack.c.bf16 %v79_v62, %v76_v59  ;;  %v75_v37 = vld [vmem:[%s3384_s0 + $0x1d8] sm:$0xff]  ;;  %v100_v62 = vld [vmem:[%s3384_s0 + $0x2a0] sm:$0xff] }
  0x74   :  { %1283 = vperm.xlu1 %1874, %v1157_v38   ;;  %v95_v38 = vld [vmem:[%s3384_s0 + $0x278] sm:$0xff] }
  0x77   :  { %1288 = vperm.xlu0 %1873, %v1158_v43  }
  0x78   :  { %1293 = vperm.xlu1 %1874, %v1159_v46  }
  0x79   :  { %645 = vmatmul.mubr.bf16.gmra.mrb[28].mxu0 %v229_v14  ;;  %837 = vmatmul.mubr.bf16.gmra.mrb[28].mxu1 %v301_v15  ;;  %v1165_v14 = vld [vmem:[%s3385_s1 + $0xf8] sm:$0xff]  ;;  %v242_v15 = vpack.c.bf16 %v86_v6, %v83_v5  ;;  %v110_v5 = vld [vmem:[%s3384_s0 + $0x2f0] sm:$0xff] }
  0x7a   :  { %652 = vmatprep.mubr.bf16.mxu0 %v233_v20  ;;  %1773 = vmatprep.mubr.msk.bf16.mxu1 %vm455_vm1, %v210_v21  ;;  %v85_v20 = vld [vmem:[%s3384_s0 + $0x228] sm:$0xff]  ;;  %v60_v21 = vld [vmem:[%s3384_s0 + $0x160] sm:$0xff]  ;;  %v102_v6 = vld [vmem:[%s3384_s0 + $0x2b0] sm:$0xff] }
  0x7b   :  { %1298 = vperm.xlu0 %1873, %v1160_v55   ;;  %v241_v27 = vpack.c.bf16 %v85_v20, %v82_v17  ;;  %v231_v30 = vpack.c.bf16 %v63_v22, %v60_v21  ;;  %v93_v55 = vld [vmem:[%s3384_s0 + $0x268] sm:$0xff]  ;;  %v111_v17 = vld [vmem:[%s3384_s0 + $0x2f8] sm:$0xff]  ;;  %v116_v21 = vld [vmem:[%s3384_s0 + $0x320] sm:$0xff] }
  0x7c   :  { %1303 = vperm.xlu1 %1874, %v1161_v56   ;;  %v247_v56 = vpack.c.bf16 %v97_v49, %v94_v48  ;;  %v113_v20 = vld [vmem:[%s3384_s0 + $0x308] sm:$0xff]  ;;  %v114_v22 = vld [vmem:[%s3384_s0 + $0x310] sm:$0xff]  ;;  %v135_v48 = vld [vmem:[%s3384_s0 + $0x3b8] sm:$0xff] }
  0x7d   :  { %v257_v26 = vpack.c.bf16 %v116_v21, %v113_v20  ;;  %v125_v49 = vld [vmem:[%s3384_s0 + $0x368] sm:$0xff] }
  0x7e   :  { %v165_v20 = vld [vmem:[%s3384_s0 + $0x4a8] sm:$0xff] }
  0x7f   :  { %1308 = vperm.xlu0 %1873, %v1162_v63   ;;  %v103_v63 = vld [vmem:[%s3384_s0 + $0x2b8] sm:$0xff] }
  0x80   :  { %1313 = vperm.xlu1 %1874, %v1163_v0   ;;  %v96_v0 = vld [vmem:[%s3384_s0 + $0x280] sm:$0xff]  ;;  %v250_v8 = vpack.c.bf16 %v103_v63, %v100_v62  ;;  %v147_v62 = vld [vmem:[%s3384_s0 + $0x418] sm:$0xff] }
  0x81   :  { %653 = vmatmul.mubr.bf16.gmra.mrb[32].mxu0 %v232_v35  ;;  %1774 = vmatmul.mubr.msk.bf16.vlgmr.msra.gmra.mrb[32].mxu1 %vm455_vm1, %v213_v36  ;;  %v91_v35 = vld [vmem:[%s3384_s0 + $0x258] sm:$0xff]  ;;  %v72_v36 = vld [vmem:[%s3384_s0 + $0x1c0] sm:$0xff] }
  0x82   :  { %660 = vmatprep.mubr.bf16.mxu0 %v236_v39  ;;  %1777 = vmatprep.mubr.msk.bf16.mxu1 %vm455_vm1, %v216_v40  ;;  %v98_v39 = vld [vmem:[%s3384_s0 + $0x290] sm:$0xff]  ;;  %v244_v42 = vpack.c.bf16 %v91_v35, %v88_v33  ;;  %v237_v43 = vpack.c.bf16 %v75_v37, %v72_v36  ;;  %v123_v33 = vld [vmem:[%s3384_s0 + $0x358] sm:$0xff] }
  0x83   :  { %1318 = vperm.xlu0 %1873, %v1164_v11   ;;  %v78_v40 = vld [vmem:[%s3384_s0 + $0x1f0] sm:$0xff]  ;;  %v248_v46 = vpack.c.bf16 %v98_v39, %v95_v38  ;;  %v252_v11 = vpack.c.bf16 %v105_v7, %v102_v6  ;;  %v119_v35 = vld [vmem:[%s3384_s0 + $0x338] sm:$0xff]  ;;  %v129_v38 = vld [vmem:[%s3384_s0 + $0x388] sm:$0xff] }
  0x84   :  { %1323 = vperm.xlu1 %1874, %v1165_v14   ;;  %v240_v47 = vpack.c.bf16 %v81_v41, %v78_v40  ;;  %v106_v14 = vld [vmem:[%s3384_s0 + $0x2d0] sm:$0xff]  ;;  %v131_v63 = vld [vmem:[%s3384_s0 + $0x398] sm:$0xff] }
  0x85   :  { %v122_v36 = vld [vmem:[%s3384_s0 + $0x350] sm:$0xff] }
  0x86   :  { %v126_v37 = vld [vmem:[%s3384_s0 + $0x370] sm:$0xff]  ;;  %v260_v41 = vpack.c.bf16 %v122_v36, %v119_v35  ;;  %v177_v35 = vld [vmem:[%s3384_s0 + $0x508] sm:$0xff] }
  0x89   :  { %661 = vmatmul.mubr.bf16.gmra.mrb[36].mxu0 %v235_v53  ;;  %1778 = vmatmul.mubr.msk.bf16.gmra.mrb[36].mxu1 %vm455_vm1, %v219_v54  ;;  %v104_v53 = vld [vmem:[%s3384_s0 + $0x2c0] sm:$0xff]  ;;  %v90_v54 = vld [vmem:[%s3384_s0 + $0x250] sm:$0xff] }
  0x8a   :  { %668 = vmatprep.mubr.bf16.mxu0 %v239_v57  ;;  %1781 = vmatprep.mubr.msk.bf16.mxu1 %vm455_vm1, %v222_v58  ;;  %v243_v57 = vpack.c.bf16 %v87_v51, %v84_v50  ;;  %v251_v58 = vpack.c.bf16 %v104_v53, %v101_v52  ;;  %v246_v59 = vpack.c.bf16 %v93_v55, %v90_v54  ;;  %v128_v50 = vld [vmem:[%s3384_s0 + $0x380] sm:$0xff]  ;;  %v138_v51 = vld [vmem:[%s3384_s0 + $0x3d0] sm:$0xff]  ;;  %v141_v52 = vld [vmem:[%s3384_s0 + $0x3e8] sm:$0xff] }
  0x8b   :  { %v263_v55 = vpack.c.bf16 %v128_v50, %v125_v49  ;;  %v189_v49 = vld [vmem:[%s3384_s0 + $0x568] sm:$0xff] }
  0x91   :  { %669 = vmatmul.mubr.bf16.gmra.mrb[40].mxu0 %v238_v9  ;;  %1782 = vmatmul.mubr.msk.bf16.gmra.mrb[40].mxu1 %vm455_vm1, %v225_v10  ;;  %v249_v9 = vpack.c.bf16 %v99_v3, %v96_v0  ;;  %v254_v10 = vpack.c.bf16 %v110_v5, %v107_v4  ;;  %v134_v0 = vld [vmem:[%s3384_s0 + $0x3b0] sm:$0xff]  ;;  %v153_v4 = vld [vmem:[%s3384_s0 + $0x448] sm:$0xff] }
  0x92   :  { %676 = vmatprep.mubr.bf16.mxu0 %v242_v15  ;;  %1785 = vmatprep.mubr.msk.bf16.mxu1 %vm455_vm1, %v228_v16  ;;  %v109_v15 = vld [vmem:[%s3384_s0 + $0x2e8] sm:$0xff]  ;;  %v108_v16 = vld [vmem:[%s3384_s0 + $0x2e0] sm:$0xff]  ;;  %v150_v3 = vld [vmem:[%s3384_s0 + $0x430] sm:$0xff]  ;;  %v266_v7 = vpack.c.bf16 %v134_v0, %v131_v63 }
  0x93   :  { %v253_v24 = vpack.c.bf16 %v109_v15, %v106_v14  ;;  %v255_v25 = vpack.c.bf16 %v111_v17, %v108_v16  ;;  %v159_v14 = vld [vmem:[%s3384_s0 + $0x478] sm:$0xff]  ;;  %v137_v15 = vld [vmem:[%s3384_s0 + $0x3c8] sm:$0xff]  ;;  %v140_v16 = vld [vmem:[%s3384_s0 + $0x3e0] sm:$0xff] }
  0x94   :  { %v162_v17 = vld [vmem:[%s3384_s0 + $0x490] sm:$0xff]  ;;  %v201_v63 = vld [vmem:[%s3384_s0 + $0x5c8] sm:$0xff] }
  0x99   :  { %677 = vmatmul.mubr.bf16.gmra.mrb[44].mxu0 %v241_v27  ;;  %1786 = vmatmul.mubr.msk.bf16.gmra.mrb[44].mxu1 %vm455_vm1, %v231_v30  ;;  %v258_v27 = vpack.c.bf16 %v117_v23, %v114_v22  ;;  %v112_v30 = vld [vmem:[%s3384_s0 + $0x300] sm:$0xff]  ;;  %v269_v23 = vpack.c.bf16 %v140_v16, %v137_v15 }
  0x9a   :  { %684 = vmatprep.mubr.bf16.mxu0 %v245_v31  ;;  %1789 = vmatprep.mubr.msk.bf16.mxu1 %vm455_vm1, %v234_v32  ;;  %v115_v31 = vld [vmem:[%s3384_s0 + $0x318] sm:$0xff]  ;;  %v120_v32 = vld [vmem:[%s3384_s0 + $0x340] sm:$0xff] }
  0x9b   :  { %v256_v39 = vpack.c.bf16 %v115_v31, %v112_v30  ;;  %v261_v40 = vpack.c.bf16 %v123_v33, %v120_v32  ;;  %v171_v30 = vld [vmem:[%s3384_s0 + $0x4d8] sm:$0xff]  ;;  %v146_v32 = vld [vmem:[%s3384_s0 + $0x410] sm:$0xff] }
  0x9c   :  { %v143_v31 = vld [vmem:[%s3384_s0 + $0x3f8] sm:$0xff]  ;;  %v174_v33 = vld [vmem:[%s3384_s0 + $0x4f0] sm:$0xff] }
  0xa1   :  { %685 = vmatmul.mubr.bf16.gmra.mrb[48].mxu0 %v244_v42  ;;  %1790 = vmatmul.mubr.msk.bf16.gmra.mrb[48].mxu1 %vm455_vm1, %v237_v43  ;;  %v264_v42 = vpack.c.bf16 %v129_v38, %v126_v37  ;;  %v118_v43 = vld [vmem:[%s3384_s0 + $0x330] sm:$0xff]  ;;  %v272_v38 = vpack.c.bf16 %v146_v32, %v143_v31 }
  0xa2   :  { %692 = vmatprep.mubr.bf16.mxu0 %v248_v46  ;;  %1793 = vmatprep.mubr.msk.bf16.mxu1 %vm455_vm1, %v240_v47  ;;  %v121_v46 = vld [vmem:[%s3384_s0 + $0x348] sm:$0xff]  ;;  %v132_v47 = vld [vmem:[%s3384_s0 + $0x3a0] sm:$0xff] }
  0xa3   :  { %v259_v53 = vpack.c.bf16 %v121_v46, %v118_v43  ;;  %v267_v54 = vpack.c.bf16 %v135_v48, %v132_v47  ;;  %v183_v43 = vld [vmem:[%s3384_s0 + $0x538] sm:$0xff]  ;;  %v149_v46 = vld [vmem:[%s3384_s0 + $0x428] sm:$0xff]  ;;  %v152_v47 = vld [vmem:[%s3384_s0 + $0x440] sm:$0xff] }
  0xa4   :  { %v186_v48 = vld [vmem:[%s3384_s0 + $0x550] sm:$0xff] }
  0xa9   :  { %693 = vmatmul.mubr.bf16.gmra.mrb[52].mxu0 %v247_v56  ;;  %1794 = vmatmul.mubr.msk.bf16.gmra.mrb[52].mxu1 %vm455_vm1, %v243_v57  ;;  %v270_v56 = vpack.c.bf16 %v141_v52, %v138_v51  ;;  %v124_v57 = vld [vmem:[%s3384_s0 + $0x360] sm:$0xff]  ;;  %v275_v52 = vpack.c.bf16 %v152_v47, %v149_v46 }
  0xaa   :  { %700 = vmatprep.mubr.bf16.mxu0 %v251_v58  ;;  %1797 = vmatprep.mubr.msk.bf16.mxu1 %vm455_vm1, %v246_v59  ;;  %v127_v58 = vld [vmem:[%s3384_s0 + $0x378] sm:$0xff]  ;;  %v144_v59 = vld [vmem:[%s3384_s0 + $0x400] sm:$0xff] }
  0xab   :  { %v262_v5 = vpack.c.bf16 %v127_v58, %v124_v57  ;;  %v273_v6 = vpack.c.bf16 %v147_v62, %v144_v59  ;;  %v195_v57 = vld [vmem:[%s3384_s0 + $0x598] sm:$0xff]  ;;  %v158_v59 = vld [vmem:[%s3384_s0 + $0x470] sm:$0xff] }
  0xac   :  { %v155_v58 = vld [vmem:[%s3384_s0 + $0x458] sm:$0xff]  ;;  %v198_v62 = vld [vmem:[%s3384_s0 + $0x5b0] sm:$0xff] }
  0xb1   :  { %701 = vmatmul.mubr.bf16.gmra.mrb[56].mxu0 %v250_v8  ;;  %1798 = vmatmul.mubr.msk.bf16.gmra.mrb[56].mxu1 %vm455_vm1, %v249_v9  ;;  %v276_v8 = vpack.c.bf16 %v153_v4, %v150_v3  ;;  %v130_v9 = vld [vmem:[%s3384_s0 + $0x390] sm:$0xff]  ;;  %v278_v4 = vpack.c.bf16 %v158_v59, %v155_v58 }
  0xb2   :  { %708 = vmatprep.mubr.bf16.mxu0 %v254_v10  ;;  %1801 = vmatprep.mubr.msk.bf16.mxu1 %vm455_vm1, %v252_v11  ;;  %v133_v10 = vld [vmem:[%s3384_s0 + $0x3a8] sm:$0xff]  ;;  %v156_v11 = vld [vmem:[%s3384_s0 + $0x460] sm:$0xff] }
  0xb3   :  { %v265_v21 = vpack.c.bf16 %v133_v10, %v130_v9  ;;  %v279_v22 = vpack.c.bf16 %v159_v14, %v156_v11  ;;  %v207_v9 = vld [vmem:[%s3384_s0 + $0x5f8] sm:$0xff] }
  0xb9   :  { %709 = vmatmul.mubr.bf16.gmra.mrb[60].mxu0 %v253_v24  ;;  %1802 = vmatmul.mubr.msk.bf16.gmra.mrb[60].mxu1 %vm455_vm1, %v255_v25  ;;  %v282_v24 = vpack.c.bf16 %v165_v20, %v162_v17  ;;  %v136_v25 = vld [vmem:[%s3384_s0 + $0x3c0] sm:$0xff] }
  0xba   :  { %716 = vmatprep.mubr.bf16.mxu0 %v257_v26  ;;  %1805 = vmatprep.mubr.msk.bf16.mxu1 %vm455_vm1, %v258_v27  ;;  %v139_v26 = vld [vmem:[%s3384_s0 + $0x3d8] sm:$0xff]  ;;  %v168_v27 = vld [vmem:[%s3384_s0 + $0x4c0] sm:$0xff] }
  0xbb   :  { %v268_v36 = vpack.c.bf16 %v139_v26, %v136_v25  ;;  %v285_v37 = vpack.c.bf16 %v171_v30, %v168_v27 }
  0xc1   :  { %717 = vmatmul.mubr.bf16.gmra.mrb[64].mxu0 %v256_v39  ;;  %1806 = vmatmul.mubr.msk.bf16.gmra.mrb[64].mxu1 %vm455_vm1, %v261_v40  ;;  %v288_v39 = vpack.c.bf16 %v177_v35, %v174_v33  ;;  %v142_v40 = vld [vmem:[%s3384_s0 + $0x3f0] sm:$0xff] }
  0xc2   :  { %724 = vmatprep.mubr.bf16.mxu0 %v260_v41  ;;  %1809 = vmatprep.mubr.msk.bf16.mxu1 %vm455_vm1, %v264_v42  ;;  %v145_v41 = vld [vmem:[%s3384_s0 + $0x408] sm:$0xff]  ;;  %v180_v42 = vld [vmem:[%s3384_s0 + $0x520] sm:$0xff] }
  0xc3   :  { %v271_v50 = vpack.c.bf16 %v145_v41, %v142_v40  ;;  %v291_v51 = vpack.c.bf16 %v183_v43, %v180_v42 }
  0xc6   :  { %v2805_v14 = vpop.permute.xlu0 %1168 }
  0xc7   :  { %v2807_v15 = vpop.permute.xlu1 %1178 }
  0xc9   :  { %725 = vmatmul.mubr.bf16.gmra.mrb[68].mxu0 %v259_v53  ;;  %1810 = vmatmul.mubr.msk.bf16.gmra.mrb[68].mxu1 %vm455_vm1, %v267_v54  ;;  %v294_v53 = vpack.c.bf16 %v189_v49, %v186_v48  ;;  %v148_v54 = vld [vmem:[%s3384_s0 + $0x420] sm:$0xff] }
  0xca   :  { %732 = vmatprep.mubr.bf16.mxu0 %v263_v55  ;;  %1813 = vmatprep.mubr.msk.bf16.mxu1 %vm455_vm1, %v270_v56  ;;  %v151_v55 = vld [vmem:[%s3384_s0 + $0x438] sm:$0xff]  ;;  %v192_v56 = vld [vmem:[%s3384_s0 + $0x580] sm:$0xff]  ;;  %v2817_v26 = vpop.permute.xlu0 %1173 }
  0xcb   :  { %v274_v0 = vpack.c.bf16 %v151_v55, %v148_v54  ;;  %v297_v3 = vpack.c.bf16 %v195_v57, %v192_v56  ;;  %v2819_v27 = vpop.permute.xlu1 %1183 }
  0xcf   :  { %v2831_v40 = vpop.permute.xlu1 %1193 }
  0xd1   :  { %733 = vmatmul.mubr.bf16.gmra.mrb[72].mxu0 %v262_v5  ;;  %1814 = vmatmul.mubr.msk.bf16.gmra.mrb[72].mxu1 %vm455_vm1, %v273_v6  ;;  %v300_v5 = vpack.c.bf16 %v201_v63, %v198_v62  ;;  %v154_v6 = vld [vmem:[%s3384_s0 + $0x450] sm:$0xff] }
  0xd2   :  { %740 = vmatprep.mubr.bf16.mxu0 %v266_v7  ;;  %1817 = vmatprep.mubr.msk.bf16.mxu1 %vm455_vm1, %v276_v8  ;;  %v157_v7 = vld [vmem:[%s3384_s0 + $0x468] sm:$0xff]  ;;  %v204_v8 = vld [vmem:[%s3384_s0 + $0x5e0] sm:$0xff] }
  0xd3   :  { %v277_v10 = vpack.c.bf16 %v157_v7, %v154_v6  ;;  %v303_v11 = vpack.c.bf16 %v207_v9, %v204_v8 }
  0xd9   :  { %741 = vmatmul.mubr.bf16.gmra.mrb[76].mxu0 %v265_v21  ;;  %1818 = vmatmul.mubr.msk.bf16.gmra.mrb[76].mxu1 %vm455_vm1, %v279_v22 }
  0xda   :  { %748 = vmatprep.mubr.bf16.mxu0 %v269_v23  ;;  %1821 = vmatprep.mubr.msk.bf16.mxu1 %vm455_vm1, %v282_v24 }
  0xe1   :  { %749 = vmatmul.mubr.bf16.gmra.mrb[80].mxu0 %v268_v36  ;;  %1822 = vmatmul.mubr.msk.bf16.gmra.mrb[80].mxu1 %vm455_vm1, %v285_v37 }
  0xe2   :  { %756 = vmatprep.mubr.bf16.mxu0 %v272_v38  ;;  %1825 = vmatprep.mubr.msk.bf16.mxu1 %vm455_vm1, %v288_v39  ;;  %v2829_v39 = vpop.permute.xlu0 %1188 }
  0xe9   :  { %757 = vmatmul.mubr.bf16.gmra.mrb[84].mxu0 %v271_v50  ;;  %1826 = vmatmul.mubr.msk.bf16.gmra.mrb[84].mxu1 %vm455_vm1, %v291_v51  ;;  %v2841_v51 = vpop.permute.xlu0 %1198 }
  0xea   :  { %764 = vmatprep.mubr.bf16.mxu0 %v275_v52  ;;  %1829 = vmatprep.mubr.msk.bf16.mxu1 %vm455_vm1, %v294_v53  ;;  %v2843_v52 = vpop.permute.xlu1 %1203 }
  0xed   :  { %v2853_v63 = vpop.permute.xlu0 %1208 }
  0xf1   :  { %765 = vmatmul.mubr.bf16.gmra.mrb[88].mxu0 %v274_v0  ;;  %1830 = vmatmul.mubr.msk.bf16.gmra.mrb[88].mxu1 %vm455_vm1, %v297_v3  ;;  %v2855_v0 = vpop.permute.xlu1 %1213 }
  0xf2   :  { %772 = vmatprep.mubr.bf16.mxu0 %v278_v4  ;;  %1833 = vmatprep.mubr.msk.bf16.mxu1 %vm455_vm1, %v300_v5 }
  0xf9   :  { %773 = vmatmul.mubr.bf16.gmra.mrb[92].mxu0 %v277_v10  ;;  %1834 = vmatmul.mubr.msk.bf16.gmra.mrb[92].mxu1 %vm455_vm1, %v303_v11  ;;  %v2865_v11 = vpop.permute.xlu0 %1218 }
 0x114   :  { %v2809_v16 = vpop.f32.mrb[0].mxu0  ;;  %v2811_v17 = vpop.f32.mrb[0].mxu1 }
 0x115   :  { %3401 = vst [vmem:[#allocation5_spill] sm:$0xff] %v2811_v17  ;;  %v592_v20 = vpop.f32.mrb[1].mxu0  ;;  %v784_v21 = vpop.f32.mrb[1].mxu1 }
 0x116   :  { %v2813_v22 = vpop.f32.mrb[2].mxu0  ;;  %v2815_v23 = vpop.f32.mrb[2].mxu1 }
 0x117   :  { %3402 = vst [vmem:[#allocation6_spill] sm:$0xff] %v2815_v23  ;;  %v595_v24 = vpop.f32.mrb[3].mxu0  ;;  %v787_v25 = vpop.f32.mrb[3].mxu1 }
 0x118   :  { %v2867_v20 = vpop.permute.xlu1 %1223 }
 0x11c   :  { %v2821_v30 = vpop.f32.mrb[4].mxu0  ;;  %v2823_v31 = vpop.f32.mrb[4].mxu1 }
 0x11d   :  { %v600_v32 = vpop.f32.mrb[5].mxu0  ;;  %v792_v33 = vpop.f32.mrb[5].mxu1 }
 0x11e   :  { %v2825_v35 = vpop.f32.mrb[6].mxu0  ;;  %v2827_v36 = vpop.f32.mrb[6].mxu1 }
 0x11f   :  { %3403 = vst [vmem:[#allocation7_spill] sm:$0xff] %v2827_v36  ;;  %v603_v37 = vpop.f32.mrb[7].mxu0  ;;  %v795_v38 = vpop.f32.mrb[7].mxu1 }
 0x124   :  { %v2833_v41 = vpop.f32.mrb[8].mxu0  ;;  %v2835_v42 = vpop.f32.mrb[8].mxu1 }
 0x125   :  { %3404 = vst [vmem:[#allocation8_spill] sm:$0xff] %v2835_v42  ;;  %v608_v43 = vpop.f32.mrb[9].mxu0  ;;  %v800_v46 = vpop.f32.mrb[9].mxu1 }
 0x126   :  { %v2837_v47 = vpop.f32.mrb[10].mxu0  ;;  %v2839_v48 = vpop.f32.mrb[10].mxu1 }
 0x127   :  { %3405 = vst [vmem:[#allocation9_spill] sm:$0xff] %v2839_v48  ;;  %v611_v49 = vpop.f32.mrb[11].mxu0  ;;  %v803_v50 = vpop.f32.mrb[11].mxu1 }
 0x128   :  { %v2877_v46 = vpop.permute.xlu0 %1228  ;;  %v2879_v49 = vpop.permute.xlu1 %1233 }
 0x12c   :  { %v2845_v53 = vpop.f32.mrb[12].mxu0  ;;  %v2847_v54 = vpop.f32.mrb[12].mxu1 }
 0x12d   :  { %3406 = vst [vmem:[#allocation10_spill] sm:$0xff] %v2847_v54  ;;  %v616_v55 = vpop.f32.mrb[13].mxu0  ;;  %v808_v56 = vpop.f32.mrb[13].mxu1 }
 0x12e   :  { %v2849_v57 = vpop.f32.mrb[14].mxu0  ;;  %v2851_v58 = vpop.f32.mrb[14].mxu1 }
 0x12f   :  { %3407 = vst [vmem:[#allocation11_spill] sm:$0xff] %v2851_v58  ;;  %v619_v59 = vpop.f32.mrb[15].mxu0  ;;  %v811_v62 = vpop.f32.mrb[15].mxu1 }
 0x134   :  { %v2857_v3 = vpop.f32.mrb[16].mxu0  ;;  %v2859_v4 = vpop.f32.mrb[16].mxu1 }
 0x135   :  { %3408 = vst [vmem:[#allocation12_spill] sm:$0xff] %v2859_v4  ;;  %v624_v5 = vpop.f32.mrb[17].mxu0  ;;  %v816_v6 = vpop.f32.mrb[17].mxu1 }
 0x136   :  { %v2861_v7 = vpop.f32.mrb[18].mxu0  ;;  %v2863_v8 = vpop.f32.mrb[18].mxu1 }
 0x137   :  { %3409 = vst [vmem:[#allocation13_spill] sm:$0xff] %v2863_v8  ;;  %v627_v9 = vpop.f32.mrb[19].mxu0  ;;  %v819_v10 = vpop.f32.mrb[19].mxu1 }
 0x138   :  { %v2889_v10 = vpop.permute.xlu0 %1238 }
 0x13c   :  { %v2869_v21 = vpop.f32.mrb[20].mxu0  ;;  %v2871_v24 = vpop.f32.mrb[20].mxu1 }
 0x13d   :  { %3410 = vst [vmem:[#allocation14_spill] sm:$0xff] %v2871_v24  ;;  %v632_v25 = vpop.f32.mrb[21].mxu0  ;;  %v824_v32 = vpop.f32.mrb[21].mxu1 }
 0x13e   :  { %v2873_v33 = vpop.f32.mrb[22].mxu0  ;;  %v2875_v37 = vpop.f32.mrb[22].mxu1 }
 0x13f   :  { %3411 = vst [vmem:[#allocation15_spill] sm:$0xff] %v2875_v37  ;;  %v635_v38 = vpop.f32.mrb[23].mxu0  ;;  %v827_v43 = vpop.f32.mrb[23].mxu1 }
 0x140   :  { %v2891_v25 = vpop.permute.xlu1 %1243  ;;  %v2901_v4 = vpop.permute.xlu0 %1248 }
 0x144   :  { %v2881_v50 = vpop.f32.mrb[24].mxu0  ;;  %v2883_v55 = vpop.f32.mrb[24].mxu1 }
 0x145   :  { %3412 = vst [vmem:[#allocation16_spill] sm:$0xff] %v2883_v55  ;;  %v640_v56 = vpop.f32.mrb[25].mxu0  ;;  %v832_v59 = vpop.f32.mrb[25].mxu1 }
 0x146   :  { %v2885_v62 = vpop.f32.mrb[26].mxu0  ;;  %v2887_v5 = vpop.f32.mrb[26].mxu1 }
 0x147   :  { %3413 = vst [vmem:[#allocation17_spill] sm:$0xff] %v2887_v5  ;;  %v643_v6 = vpop.f32.mrb[27].mxu0  ;;  %v835_v9 = vpop.f32.mrb[27].mxu1 }
 0x148   :  { %v2903_v6 = vpop.permute.xlu1 %1253 }
 0x14c   :  { %v2893_v32 = vpop.f32.mrb[28].mxu0  ;;  %v2895_v38 = vpop.f32.mrb[28].mxu1 }
 0x14d   :  { %3414 = vst [vmem:[#allocation18_spill] sm:$0xff] %v2895_v38  ;;  %v648_v43 = vpop.f32.mrb[29].mxu0  ;;  %v840_v8 = vpop.f32.mrb[29].mxu1 }
 0x14e   :  { %v2897_v37 = vpop.f32.mrb[30].mxu0  ;;  %v2899_v56 = vpop.f32.mrb[30].mxu1 }
 0x14f   :  { %3415 = vst [vmem:[#allocation19_spill] sm:$0xff] %v2899_v56  ;;  %v651_v59 = vpop.f32.mrb[31].mxu0  ;;  %v843_v55 = vpop.f32.mrb[31].mxu1 }
 0x154   :  { %v2905_v9 = vpop.f32.mrb[32].mxu0  ;;  %v1775_v5 = vpop.f32.mrb[32].mxu1 }
 0x155   :  { %v888_v24 = vadd.f32 %v1775_v5, %v2821_v30  ;;  %v656_v48 = vpop.f32.mrb[33].mxu0  ;;  %v879_v58 = vpop.f32.mrb[33].mxu1 }
 0x156   :  { %v880_v43 = vadd.f32 %v879_v58, %v2809_v16  ;;  %v2909_v8 = vpop.f32.mrb[34].mxu0  ;;  %v1776_v38 = vpop.f32.mrb[34].mxu1 }
 0x157   :  { %v1328_v56 = vmul.f32 %v2807_v15, %v888_v24  ;;  %v891_v55 = vadd.f32 %v1776_v38, %v2825_v35  ;;  %v659_v59 = vpop.f32.mrb[35].mxu0  ;;  %v882_v42 = vpop.f32.mrb[35].mxu1 }
 0x158   :  { %v1326_v54 = vmul.f32 %v2805_v14, %v880_v43  ;;  %v883_v23 = vadd.f32 %v882_v42, %v2813_v22  ;;  %v2920_v5 = vpop.permute.xlu0 %1258  ;;  %v2922_v24 = vpop.permute.xlu1 %1263 }
 0x159   :  { %v1329_v36 = vmul.f32 %v2819_v27, %v891_v55  ;;  %v1392_v30 = vadd.f32 %v1328_v56, %v2160_v2 }
 0x15a   :  { %v1390_v48 = vadd.f32 %v1326_v54, %v2155_v1  ;;  %v1327_v16 = vmul.f32 %v2817_v26, %v883_v23 }
 0x15b   :  { %v1393_v58 = vadd.f32 %v1329_v36, %v2190_v13  ;;  %v1456_v1 = vmax.f32 %v1392_v30, 0.0 }
 0x15c   :  { %v1454_v35 = vmax.f32 %v1390_v48, 0.0  ;;  %v1391_v38 = vadd.f32 %v1327_v16, %v2185_v12  ;;  %v2925_v43 = vpop.f32.mrb[36].mxu0  ;;  %v1779_v22 = vpop.f32.mrb[36].mxu1 }
 0x15d   :  { %v904_v42 = vadd.f32 %v1779_v22, %v2845_v53  ;;  %v664_v2 = vpop.f32.mrb[37].mxu0  ;;  %v895_v56 = vpop.f32.mrb[37].mxu1  ;;  %v1457_v55 = vmax.f32 %v1393_v58, 0.0 }
 0x15e   :  { %v1455_v54 = vmax.f32 %v1391_v38, 0.0  ;;  %v896_v23 = vadd.f32 %v895_v56, %v2833_v41  ;;  %v2929_v13 = vpop.f32.mrb[38].mxu0  ;;  %v1780_v36 = vpop.f32.mrb[38].mxu1  ;;  %v1519_v17 = vsel %vm1518_vm2, %v1454_v35, 0.0  ;;  %v1522_v2 = vsel %vm1518_vm2, %v1456_v1, 0.0 }
 0x15f   :  { %v1332_v59 = vmul.f32 %v2841_v51, %v904_v42  ;;  %v907_v12 = vadd.f32 %v1780_v36, %v2849_v57  ;;  %v667_v48 = vpop.f32.mrb[39].mxu0  ;;  %v898_v16 = vpop.f32.mrb[39].mxu1 }
 0x160   :  { %v1520_v53 = vsel %vm1518_vm2, %v1455_v54, 0.0  ;;  %v1330_v22 = vmul.f32 %v2829_v39, %v896_v23  ;;  %v899_v30 = vadd.f32 %v898_v16, %v2837_v47  ;;  %v2942_v36 = vpop.permute.xlu0 %1268  ;;  %v2944_v35 = vpop.permute.xlu1 %1273  ;;  %v1524_v54 = vsel %vm1518_vm2, %v1457_v55, 0.0 }
 0x161   :  { %v1521_v38 = vadd.f32 %v1520_v53, %v1519_v17  ;;  %v1333_v41 = vmul.f32 %v2843_v52, %v907_v12  ;;  %v1396_v42 = vadd.f32 %v1332_v59, %v2233_v28 }
 0x162   :  { %v1394_v58 = vadd.f32 %v1330_v22, %v2203_v18  ;;  %v1331_v57 = vmul.f32 %v2831_v40, %v899_v30 }
 0x163   :  { %v1523_v56 = vadd.f32 %v1522_v2, %v1521_v38  ;;  %v1397_v47 = vadd.f32 %v1333_v41, %v2238_v29  ;;  %v1460_v53 = vmax.f32 %v1396_v42, 0.0 }
 0x164   :  { %v1458_v23 = vmax.f32 %v1394_v58, 0.0  ;;  %v1395_v17 = vadd.f32 %v1331_v57, %v2208_v19  ;;  %v2949_v12 = vpop.f32.mrb[40].mxu0  ;;  %v1783_v1 = vpop.f32.mrb[40].mxu1 }
 0x165   :  { %v1525_v18 = vadd.f32 %v1524_v54, %v1523_v56  ;;  %v920_v28 = vadd.f32 %v1783_v1, %v2869_v21  ;;  %v672_v59 = vpop.f32.mrb[41].mxu0  ;;  %v911_v48 = vpop.f32.mrb[41].mxu1  ;;  %v1461_v57 = vmax.f32 %v1397_v47, 0.0 }
 0x166   :  { %v1526_v16 = vsel %vm1518_vm2, %v1458_v23, 0.0  ;;  %v1459_v22 = vmax.f32 %v1395_v17, 0.0  ;;  %v912_v30 = vadd.f32 %v911_v48, %v2857_v3  ;;  %v2954_v55 = vpop.f32.mrb[42].mxu0  ;;  %v1784_v38 = vpop.f32.mrb[42].mxu1  ;;  %v1530_v23 = vsel %vm1518_vm2, %v1460_v53, 0.0 }
 0x167   :  { %v1527_v19 = vadd.f32 %v1526_v16, %v1525_v18  ;;  %v1336_v29 = vmul.f32 %v2865_v11, %v920_v28  ;;  %v923_v41 = vadd.f32 %v1784_v38, %v2873_v33  ;;  %v675_v2 = vpop.f32.mrb[43].mxu0  ;;  %v914_v58 = vpop.f32.mrb[43].mxu1  ;;  %v1532_v47 = vsel %vm1518_vm2, %v1461_v57, 0.0 }
 0x168   :  { %v1528_v21 = vsel %vm1518_vm2, %v1459_v22, 0.0  ;;  %v1334_v56 = vmul.f32 %v2853_v63, %v912_v30  ;;  %v915_v42 = vadd.f32 %v914_v58, %v2861_v7  ;;  %v2966_v28 = vpop.permute.xlu0 %1278  ;;  %v2968_v59 = vpop.permute.xlu1 %1283  ;;  %v2974_v7 = vld [vmem:[%s3385_s1 + $0x48] sm:$0xff] }
 0x169   :  { %v1529_v54 = vadd.f32 %v1528_v21, %v1527_v19  ;;  %v1337_v3 = vmul.f32 %v2867_v20, %v923_v41  ;;  %v1400_v1 = vadd.f32 %v1336_v29, %v2278_v44  ;;  %3416 = vst [vmem:[#allocation20_spill] sm:$0xff] %v2968_v59 }
 0x16a   :  { %v1398_v17 = vadd.f32 %v1334_v56, %v2251_v34  ;;  %v1335_v33 = vmul.f32 %v2855_v0, %v915_v42 }
 0x16b   :  { %v1531_v18 = vadd.f32 %v1530_v23, %v1529_v54  ;;  %v1401_v34 = vadd.f32 %v1337_v3, %v2283_v45  ;;  %v1464_v41 = vmax.f32 %v1400_v1, 0.0 }
 0x16c   :  { %v1462_v48 = vmax.f32 %v1398_v17, 0.0  ;;  %v1399_v16 = vadd.f32 %v2974_v7, %v1335_v33  ;;  %v2978_v44 = vpop.f32.mrb[44].mxu0  ;;  %v1787_v53 = vpop.f32.mrb[44].mxu1 }
 0x16d   :  { %v1533_v22 = vadd.f32 %v1532_v47, %v1531_v18  ;;  %v936_v30 = vadd.f32 %v1787_v53, %v2893_v32  ;;  %v680_v38 = vpop.f32.mrb[45].mxu0  ;;  %v927_v19 = vpop.f32.mrb[45].mxu1  ;;  %v1465_v23 = vmax.f32 %v1401_v34, 0.0  ;;  %v1538_v18 = vsel %vm1518_vm2, %v1464_v41, 0.0  ;;  %v2995_v47 = vld [vmem:[%s3385_s1 + $0x60] sm:$0xff] }
 0x16e   :  { %v1534_v29 = vsel %vm1518_vm2, %v1462_v48, 0.0  ;;  %v1463_v2 = vmax.f32 %v1399_v16, 0.0  ;;  %v928_v58 = vadd.f32 %v927_v19, %v2881_v50  ;;  %v2983_v21 = vpop.f32.mrb[46].mxu0  ;;  %v1788_v57 = vpop.f32.mrb[46].mxu1  ;;  %v3008_v38 = vld [vmem:[%s3385_s1 + $0x68] sm:$0xff] }
 0x16f   :  { %v1535_v56 = vadd.f32 %v1534_v29, %v1533_v22  ;;  %v1340_v45 = vmul.f32 %v2889_v10, %v936_v30  ;;  %v939_v42 = vadd.f32 %v1788_v57, %v2897_v37  ;;  %v683_v54 = vpop.f32.mrb[47].mxu0  ;;  %v930_v3 = vpop.f32.mrb[47].mxu1  ;;  %v1540_v22 = vsel %vm1518_vm2, %v1465_v23, 0.0 }
 0x170   :  { %v1536_v32 = vsel %vm1518_vm2, %v1463_v2, 0.0  ;;  %v1338_v17 = vmul.f32 %v2877_v46, %v928_v58  ;;  %v931_v1 = vadd.f32 %v930_v3, %v2885_v62  ;;  %v3000_v53 = vpop.permute.xlu0 %1288  ;;  %v3002_v62 = vpop.permute.xlu1 %1293 }
 0x171   :  { %v1537_v33 = vadd.f32 %v1536_v32, %v1535_v56  ;;  %v1341_v50 = vmul.f32 %v2891_v25, %v939_v42  ;;  %v1404_v48 = vadd.f32 %v1340_v45, %v2320_v60 }
 0x172   :  { %v1402_v37 = vadd.f32 %v2995_v47, %v1338_v17  ;;  %v1339_v16 = vmul.f32 %v2879_v49, %v931_v1 }
 0x173   :  { %v1539_v34 = vadd.f32 %v1538_v18, %v1537_v33  ;;  %v1405_v29 = vadd.f32 %v1341_v50, %v2325_v61  ;;  %v1468_v42 = vmax.f32 %v1404_v48, 0.0 }
 0x174   :  { %v1466_v30 = vmax.f32 %v1402_v37, 0.0  ;;  %v1403_v19 = vadd.f32 %v3008_v38, %v1339_v16  ;;  %v3012_v60 = vpop.f32.mrb[48].mxu0  ;;  %v1791_v41 = vpop.f32.mrb[48].mxu1 }
 0x175   :  { %v1541_v2 = vadd.f32 %v1540_v22, %v1539_v34  ;;  %v952_v58 = vadd.f32 %v1791_v41, %v2925_v43  ;;  %v688_v57 = vpop.f32.mrb[49].mxu0  ;;  %v943_v56 = vpop.f32.mrb[49].mxu1  ;;  %v1469_v18 = vmax.f32 %v1405_v29, 0.0  ;;  %v1546_v34 = vsel %vm1518_vm2, %v1468_v42, 0.0  ;;  %v3029_v22 = vld [vmem:[%s3385_s1 + $0x80] sm:$0xff]  ;;  %v3053_v42 = vld [vmem:[%s3385_s1 + $0x98] sm:$0xff] }
 0x176   :  { %v1542_v45 = vsel %vm1518_vm2, %v1466_v30, 0.0  ;;  %v1467_v54 = vmax.f32 %v1403_v19, 0.0  ;;  %v944_v3 = vadd.f32 %v943_v56, %v2905_v9  ;;  %v3017_v32 = vpop.f32.mrb[50].mxu0  ;;  %v1792_v23 = vpop.f32.mrb[50].mxu1  ;;  %v3035_v30 = vld [vmem:[%s3385_s1 + $0x90] sm:$0xff]  ;;  %v3047_v56 = vld [vmem:[%s3385_s1 + $0x88] sm:$0xff] }
 0x177   :  { %v1543_v17 = vadd.f32 %v1542_v45, %v1541_v2  ;;  %v1344_v61 = vmul.f32 %v2920_v5, %v952_v58  ;;  %v955_v1 = vadd.f32 %v1792_v23, %v2929_v13  ;;  %v691_v33 = vpop.f32.mrb[51].mxu0  ;;  %v946_v50 = vpop.f32.mrb[51].mxu1  ;;  %v1548_v58 = vsel %vm1518_vm2, %v1469_v18, 0.0  ;;  %3418 = vst [vmem:[#allocation22_spill] sm:$0xff] %v3053_v42 }
 0x178   :  { %v1544_v43 = vsel %vm1518_vm2, %v1467_v54, 0.0  ;;  %v1342_v37 = vmul.f32 %v2901_v4, %v944_v3  ;;  %v947_v48 = vadd.f32 %v946_v50, %v2909_v8  ;;  %v3039_v41 = vpop.permute.xlu0 %1298  ;;  %v3041_v2 = vpop.permute.xlu1 %1303 }
 0x179   :  { %v1545_v16 = vadd.f32 %v1544_v43, %v1543_v17  ;;  %v1345_v9 = vmul.f32 %v2922_v24, %v955_v1  ;;  %v1408_v19 = vadd.f32 %v3035_v30, %v1344_v61  ;;  %3417 = vst [vmem:[#allocation21_spill] sm:$0xff] %v3041_v2 }
 0x17a   :  { %v1406_v13 = vadd.f32 %v3029_v22, %v1342_v37  ;;  %v1343_v8 = vmul.f32 %v2903_v6, %v947_v48 }
 0x17b   :  { %v1547_v29 = vadd.f32 %v1546_v34, %v1545_v16  ;;  %v1409_v54 = vadd.f32 %v3053_v42, %v1345_v9  ;;  %v1472_v43 = vmax.f32 %v1408_v19, 0.0 }
 0x17c   :  { %v1470_v57 = vmax.f32 %v1406_v13, 0.0  ;;  %v1407_v45 = vadd.f32 %v3047_v56, %v1343_v8  ;;  %v694_v3 = vpop.f32.mrb[52].mxu0  ;;  %v1795_v23 = vpop.f32.mrb[52].mxu1 }
 0x17d   :  { %v1549_v17 = vadd.f32 %v1548_v58, %v1547_v29  ;;  %v968_v61 = vadd.f32 %v1795_v23, %v2978_v44  ;;  %v696_v1 = vpop.f32.mrb[53].mxu0  ;;  %v959_v33 = vpop.f32.mrb[53].mxu1  ;;  %v1473_v44 = vmax.f32 %v1409_v54, 0.0  ;;  %v3069_v23 = vld [vmem:[%s3385_s1 + $0xa0] sm:$0xff]  ;;  %v3075_v54 = vld [vmem:[%s3385_s1 + $0xb0] sm:$0xff] }
 0x17e   :  { %v1550_v50 = vsel %vm1518_vm2, %v1470_v57, 0.0  ;;  %v1471_v18 = vmax.f32 %v1407_v45, 0.0  ;;  %v960_v37 = vadd.f32 %v959_v33, %v2949_v12  ;;  %v697_v48 = vpop.f32.mrb[54].mxu0  ;;  %v1796_v16 = vpop.f32.mrb[54].mxu1  ;;  %v1554_v12 = vsel %vm1518_vm2, %v1472_v43, 0.0  ;;  %3419 = vst [vmem:[#allocation23_spill] sm:$0xff] %v3069_v23 }
 0x17f   :  { %v1551_v34 = vadd.f32 %v1550_v50, %v1549_v17  ;;  %v1348_v13 = vmul.f32 %v2966_v28, %v968_v61  ;;  %v971_v9 = vadd.f32 %v1796_v16, %v2983_v21  ;;  %v699_v8 = vpop.f32.mrb[55].mxu0  ;;  %v962_v42 = vpop.f32.mrb[55].mxu1  ;;  %3420 = vst [vmem:[#allocation24_spill] sm:$0xff] %v3075_v54  ;;  %v1556_v33 = vsel %vm1518_vm2, %v1473_v44, 0.0  ;;  %v3087_v43 = vld [vmem:[%s3385_s1 + $0xa8] sm:$0xff] }
 0x180   :  { %v1552_v29 = vsel %vm1518_vm2, %v1471_v18, 0.0  ;;  %v1346_v58 = vmul.f32 %v2942_v36, %v960_v37  ;;  %v963_v57 = vadd.f32 %v962_v42, %v2954_v55  ;;  %v3079_v61 = vpop.permute.xlu0 %1308  ;;  %v3081_v1 = vpop.permute.xlu1 %1313  ;;  %3421 = vst [vmem:[#allocation25_spill] sm:$0xff] %v3087_v43  ;;  %v3093_v37 = vld [vmem:[%s3385_s1 + $0xb8] sm:$0xff] }
 0x181   :  { %v1553_v19 = vadd.f32 %v1552_v29, %v1551_v34  ;;  %v1349_v45 = vmul.f32 %v2968_v59, %v971_v9  ;;  %v1412_v17 = vadd.f32 %v3075_v54, %v1348_v13  ;;  %3422 = vst [vmem:[#allocation26_spill] sm:$0xff] %v3093_v37 }
 0x182   :  { %v1410_v21 = vadd.f32 %v3069_v23, %v1346_v58  ;;  %v1347_v55 = vmul.f32 %v2944_v35, %v963_v57 }
 0x183   :  { %v1555_v42 = vadd.f32 %v1554_v12, %v1553_v19  ;;  %v1413_v16 = vadd.f32 %v3093_v37, %v1349_v45  ;;  %v1476_v57 = vmax.f32 %v1412_v17, 0.0 }
 0x184   :  { %v1474_v50 = vmax.f32 %v1410_v21, 0.0  ;;  %v1411_v18 = vadd.f32 %v3087_v43, %v1347_v55  ;;  %v702_v34 = vpop.f32.mrb[56].mxu0  ;;  %v1799_v13 = vpop.f32.mrb[56].mxu1 }
 0x185   :  { %v1557_v9 = vadd.f32 %v1556_v33, %v1555_v42  ;;  %v984_v8 = vadd.f32 %v1799_v13, %v694_v3  ;;  %v704_v29 = vpop.f32.mrb[57].mxu0  ;;  %v975_v44 = vpop.f32.mrb[57].mxu1  ;;  %v1477_v42 = vmax.f32 %v1413_v16, 0.0 }
 0x186   :  { %v1558_v58 = vsel %vm1518_vm2, %v1474_v50, 0.0  ;;  %v1475_v19 = vmax.f32 %v1411_v18, 0.0  ;;  %v976_v12 = vadd.f32 %v975_v44, %v3012_v60  ;;  %v705_v21 = vpop.f32.mrb[58].mxu0  ;;  %v1800_v55 = vpop.f32.mrb[58].mxu1  ;;  %v1562_v60 = vsel %vm1518_vm2, %v1476_v57, 0.0  ;;  %v3107_v18 = vld [vmem:[%s3385_s1 + $0xc0] sm:$0xff] }
 0x187   :  { %v1559_v54 = vadd.f32 %v1558_v58, %v1557_v9  ;;  %v1352_v43 = vmul.f32 %v3039_v41, %v984_v8  ;;  %v987_v59 = vadd.f32 %v1800_v55, %v697_v48  ;;  %v707_v23 = vpop.f32.mrb[59].mxu0  ;;  %v978_v45 = vpop.f32.mrb[59].mxu1  ;;  %3423 = vst [vmem:[#allocation27_spill] sm:$0xff] %v3107_v18  ;;  %v1564_v13 = vsel %vm1518_vm2, %v1477_v42, 0.0  ;;  %v3125_v8 = vld [vmem:[%s3385_s1 + $0xc8] sm:$0xff] }
 0x188   :  { %v1560_v37 = vsel %vm1518_vm2, %v1475_v19, 0.0  ;;  %v1350_v3 = vmul.f32 %v3000_v53, %v976_v12  ;;  %v979_v33 = vadd.f32 %v978_v45, %v3017_v32  ;;  %v3113_v23 = vld [vmem:[%s3385_s1 + $0xd0] sm:$0xff]  ;;  %3425 = vst [vmem:[#allocation29_spill] sm:$0xff] %v3125_v8 }
 0x189   :  { %v1561_v50 = vadd.f32 %v1560_v37, %v1559_v54  ;;  %v1353_v17 = vmul.f32 %v3041_v2, %v987_v59  ;;  %3424 = vst [vmem:[#allocation28_spill] sm:$0xff] %v3113_v23  ;;  %v1416_v16 = vadd.f32 %v3113_v23, %v1352_v43  ;;  %v3117_v59 = vpop.permute.xlu0 %1318  ;;  %v3119_v37 = vpop.permute.xlu1 %1323  ;;  %v3131_v43 = vld [vmem:[%s3385_s1 + $0xd8] sm:$0xff] }
 0x18a   :  { %v1414_v48 = vadd.f32 %v3107_v18, %v1350_v3  ;;  %v1351_v32 = vmul.f32 %v3002_v62, %v979_v33  ;;  %3426 = vst [vmem:[#allocation30_spill] sm:$0xff] %v3131_v43 }
 0x18b   :  { %v1563_v54 = vadd.f32 %v1562_v60, %v1561_v50  ;;  %v1417_v44 = vadd.f32 %v3131_v43, %v1353_v17  ;;  %v1480_v3 = vmax.f32 %v1416_v16, 0.0 }
 0x18c   :  { %v1478_v9 = vmax.f32 %v1414_v48, 0.0  ;;  %v1415_v29 = vadd.f32 %v3125_v8, %v1351_v32  ;;  %v710_v58 = vpop.f32.mrb[60].mxu0  ;;  %v1803_v57 = vpop.f32.mrb[60].mxu1 }
 0x18d   :  { %v1565_v19 = vadd.f32 %v1564_v13, %v1563_v54  ;;  %v1000_v12 = vadd.f32 %v1803_v57, %v710_v58  ;;  %v712_v55 = vpop.f32.mrb[61].mxu0  ;;  %v991_v45 = vpop.f32.mrb[61].mxu1  ;;  %v1481_v43 = vmax.f32 %v1417_v44, 0.0  ;;  %v1570_v16 = vsel %vm1518_vm2, %v1480_v3, 0.0 }
 0x18e   :  { %v1566_v42 = vsel %vm1518_vm2, %v1478_v9, 0.0  ;;  %v1479_v33 = vmax.f32 %v1415_v29, 0.0  ;;  %v992_v50 = vadd.f32 %v991_v45, %v702_v34  ;;  %v713_v60 = vpop.f32.mrb[62].mxu0  ;;  %v1804_v48 = vpop.f32.mrb[62].mxu1  ;;  %v3143_v34 = vld [vmem:[%s3385_s1 + $0xe0] sm:$0xff]  ;;  %v3163_v55 = vld [vmem:[%s3385_s1 + $0xf8] sm:$0xff] }
 0x18f   :  { %v1567_v32 = vadd.f32 %v1566_v42, %v1565_v19  ;;  %v1356_v23 = vmul.f32 %v3117_v59, %v1000_v12  ;;  %v1003_v8 = vadd.f32 %v1804_v48, %v713_v60  ;;  %v715_v2 = vpop.f32.mrb[63].mxu0  ;;  %v994_v18 = vpop.f32.mrb[63].mxu1  ;;  %v3157_v19 = vld [vmem:[%s3385_s1 + $0xe8] sm:$0xff]  ;;  %3428 = vst [vmem:[#allocation32_spill] sm:$0xff] %v3163_v55 }
 0x190   :  { %v1568_v17 = vsel %vm1518_vm2, %v1479_v33, 0.0  ;;  %v1354_v54 = vmul.f32 %v3079_v61, %v992_v50  ;;  %v995_v13 = vadd.f32 %v994_v18, %v705_v21  ;;  %v3149_v2 = vld [vmem:[%s3385_s1 + $0xf0] sm:$0xff] }
 0x191   :  { %v1569_v58 = vadd.f32 %v1568_v17, %v1567_v32  ;;  %v1357_v9 = vmul.f32 %v3119_v37, %v1003_v8  ;;  %3427 = vst [vmem:[#allocation31_spill] sm:$0xff] %v3149_v2  ;;  %v1420_v44 = vadd.f32 %v3149_v2, %v1356_v23  ;;  %v1572_v8 = vsel %vm1518_vm2, %v1481_v43, 0.0 }
 0x192   :  { %v1418_v29 = vadd.f32 %v3143_v34, %v1354_v54  ;;  %v1355_v21 = vmul.f32 %v3081_v1, %v995_v13 }
 0x193   :  { %v1571_v18 = vadd.f32 %v1570_v16, %v1569_v58  ;;  %v1421_v23 = vadd.f32 %v3163_v55, %v1357_v9  ;;  %v1484_v60 = vmax.f32 %v1420_v44, 0.0  ;;  %v1913_v44 = vld [vmem:[%s3385_s1] sm:$0xff] }
 0x194   :  { %v1482_v57 = vmax.f32 %v1418_v29, 0.0  ;;  %v1419_v12 = vadd.f32 %v3157_v19, %v1355_v21  ;;  %v718_v45 = vpop.f32.mrb[64].mxu0  ;;  %v1807_v42 = vpop.f32.mrb[64].mxu1 }
 0x195   :  { %v1573_v3 = vadd.f32 %v1572_v8, %v1571_v18  ;;  %v720_v33 = vpop.f32.mrb[65].mxu0  ;;  %v1007_v43 = vpop.f32.mrb[65].mxu1  ;;  %v1485_v21 = vmax.f32 %v1421_v23, 0.0  ;;  %v1578_v18 = vsel %vm1518_vm2, %v1484_v60, 0.0  ;;  %v1914_v23 = vld [vmem:[%s3385_s1 + $0x8] sm:$0xff] }
 0x196   :  { %v1574_v50 = vsel %vm1518_vm2, %v1482_v57, 0.0  ;;  %v1483_v48 = vmax.f32 %v1419_v12, 0.0  ;;  %v1008_v32 = vadd.f32 %v1007_v43, %v718_v45  ;;  %v721_v17 = vpop.f32.mrb[66].mxu0  ;;  %v1808_v54 = vpop.f32.mrb[66].mxu1 }
 0x197   :  { %v1575_v13 = vadd.f32 %v1574_v50, %v1573_v3  ;;  %v723_v58 = vpop.f32.mrb[67].mxu0  ;;  %v1010_v16 = vpop.f32.mrb[67].mxu1  ;;  %v1580_v45 = vsel %vm1518_vm2, %v1485_v21, 0.0 }
 0x198   :  { %v1576_v29 = vsel %vm1518_vm2, %v1483_v48, 0.0  ;;  %v1358_v9 = vmul.f32 %v2805_v14, %v1008_v32  ;;  %v1011_v55 = vadd.f32 %v1010_v16, %v721_v17 }
 0x199   :  { %v1577_v2 = vadd.f32 %v1576_v29, %v1575_v13 }
 0x19a   :  { %v1422_v8 = vadd.f32 %v1913_v44, %v1358_v9  ;;  %v1359_v57 = vmul.f32 %v2817_v26, %v1011_v55 }
 0x19b   :  { %v1579_v12 = vadd.f32 %v1578_v18, %v1577_v2  ;;  %v1915_v18 = vld [vmem:[%s3385_s1 + $0x10] sm:$0xff] }
 0x19c   :  { %v1486_v3 = vmax.f32 %v1422_v8, 0.0  ;;  %v1423_v14 = vadd.f32 %v1914_v23, %v1359_v57  ;;  %v726_v33 = vpop.f32.mrb[68].mxu0  ;;  %v1811_v43 = vpop.f32.mrb[68].mxu1 }
 0x19d   :  { %v3178_v50 = vadd.f32 %v1580_v45, %v1579_v12  ;;  %v1016_v60 = vadd.f32 %v1807_v42, %v726_v33  ;;  %v728_v48 = vpop.f32.mrb[69].mxu0  ;;  %v1023_v32 = vpop.f32.mrb[69].mxu1 }
 0x19e   :  { %v1487_v17 = vmax.f32 %v1423_v14, 0.0  ;;  %v729_v13 = vpop.f32.mrb[70].mxu0  ;;  %v1812_v58 = vpop.f32.mrb[70].mxu1  ;;  %v1588_v29 = vsel %vm1518_vm2, %v1486_v3, 0.0 }
 0x19f   :  { %v1360_v26 = vmul.f32 %v2807_v15, %v1016_v60  ;;  %v1019_v2 = vadd.f32 %v1808_v54, %v729_v13  ;;  %v731_v55 = vpop.f32.mrb[71].mxu0  ;;  %v1026_v16 = vpop.f32.mrb[71].mxu1  ;;  %v1916_v15 = vld [vmem:[%s3385_s1 + $0x18] sm:$0xff] }
 0x1a0   :  { %v1589_v21 = vsel %vm1518_vm2, %v1487_v17, 0.0 }
 0x1a1   :  { %v1590_v9 = vadd.f32 %v1589_v21, %v1588_v29  ;;  %v1424_v42 = vadd.f32 %v1915_v18, %v1360_v26  ;;  %v1361_v44 = vmul.f32 %v2819_v27, %v1019_v2  ;;  %v1917_v21 = vld [vmem:[%s3385_s1 + $0x20] sm:$0xff] }
 0x1a3   :  { %v1488_v8 = vmax.f32 %v1424_v42, 0.0  ;;  %v1425_v54 = vadd.f32 %v1916_v15, %v1361_v44 }
 0x1a4   :  { %v734_v57 = vpop.f32.mrb[72].mxu0  ;;  %v3190_v12 = vpop.f32.mrb[72].mxu1 }
 0x1a5   :  { %v1591_v45 = vsel %vm1518_vm2, %v1488_v8, 0.0  ;;  %v1489_v3 = vmax.f32 %v1425_v54, 0.0  ;;  %v1024_v23 = vadd.f32 %v1023_v32, %v734_v57  ;;  %v736_v14 = vpop.f32.mrb[73].mxu0  ;;  %v1039_v33 = vpop.f32.mrb[73].mxu1 }
 0x1a6   :  { %v1592_v60 = vadd.f32 %v1591_v45, %v1590_v9  ;;  %v737_v48 = vpop.f32.mrb[74].mxu0  ;;  %v3193_v17 = vpop.f32.mrb[74].mxu1  ;;  %v1918_v9 = vld [vmem:[%s3385_s1 + $0x28] sm:$0xff] }
 0x1a7   :  { %v1593_v27 = vsel %vm1518_vm2, %v1489_v3, 0.0  ;;  %v1362_v13 = vmul.f32 %v2829_v39, %v1024_v23  ;;  %v1027_v26 = vadd.f32 %v1026_v16, %v737_v48  ;;  %v739_v2 = vpop.f32.mrb[75].mxu0  ;;  %v1042_v55 = vpop.f32.mrb[75].mxu1 }
 0x1a8   :  { %v1594_v29 = vadd.f32 %v1593_v27, %v1592_v60 }
 0x1a9   :  { %v1426_v18 = vadd.f32 %v1917_v21, %v1362_v13  ;;  %v1363_v32 = vmul.f32 %v2831_v40, %v1027_v26 }
 0x1ab   :  { %v1490_v42 = vmax.f32 %v1426_v18, 0.0  ;;  %v1427_v44 = vadd.f32 %v1918_v9, %v1363_v32  ;;  %v1920_v18 = vld [vmem:[%s3385_s1 + $0x38] sm:$0xff] }
 0x1ac   :  { %v742_v8 = vpop.f32.mrb[76].mxu0  ;;  %v3204_v15 = vpop.f32.mrb[76].mxu1 }
 0x1ad   :  { %v1595_v39 = vsel %vm1518_vm2, %v1490_v42, 0.0  ;;  %v1491_v16 = vmax.f32 %v1427_v44, 0.0  ;;  %v1032_v54 = vadd.f32 %v1811_v43, %v742_v8  ;;  %v744_v57 = vpop.f32.mrb[77].mxu0  ;;  %v3207_v45 = vpop.f32.mrb[77].mxu1  ;;  %v1919_v43 = vld [vmem:[%s3385_s1 + $0x30] sm:$0xff] }
 0x1ae   :  { %v1596_v3 = vadd.f32 %v1595_v39, %v1594_v29  ;;  %v745_v23 = vpop.f32.mrb[78].mxu0  ;;  %v3209_v14 = vpop.f32.mrb[78].mxu1  ;;  %v3429_v57 = vld [vmem:[#allocation5_spill] sm:$0xff] }
 0x1af   :  { %v1597_v40 = vsel %vm1518_vm2, %v1491_v16, 0.0  ;;  %v1364_v60 = vmul.f32 %v2841_v51, %v1032_v54  ;;  %v1035_v48 = vadd.f32 %v1812_v58, %v745_v23  ;;  %v747_v27 = vpop.f32.mrb[79].mxu0  ;;  %v3213_v13 = vpop.f32.mrb[79].mxu1 }
 0x1b0   :  { %v1598_v26 = vadd.f32 %v1597_v40, %v1596_v3 }
 0x1b1   :  { %v1428_v2 = vadd.f32 %v1919_v43, %v1364_v60  ;;  %v1365_v21 = vmul.f32 %v2843_v52, %v1035_v48 }
 0x1b3   :  { %v1492_v29 = vmax.f32 %v1428_v2, 0.0  ;;  %v1429_v32 = vadd.f32 %v1920_v18, %v1365_v21 }
 0x1b4   :  { %v750_v42 = vpop.f32.mrb[80].mxu0  ;;  %v1823_v51 = vpop.f32.mrb[80].mxu1 }
 0x1b5   :  { %v1599_v58 = vsel %vm1518_vm2, %v1492_v29, 0.0  ;;  %v1493_v9 = vmax.f32 %v1429_v32, 0.0  ;;  %v1040_v44 = vadd.f32 %v1039_v33, %v750_v42  ;;  %v3224_v8 = vadd.f32 %v1823_v51, %v2823_v31  ;;  %v752_v39 = vpop.f32.mrb[81].mxu0  ;;  %v1071_v16 = vpop.f32.mrb[81].mxu1  ;;  %v3430_v33 = vld [vmem:[#allocation7_spill] sm:$0xff]  ;;  %v3431_v31 = vld [vmem:[#allocation6_spill] sm:$0xff] }
 0x1b6   :  { %v1600_v54 = vadd.f32 %v1599_v58, %v1598_v26  ;;  %v3227_v52 = vadd.f32 %v1071_v16, %v3429_v57  ;;  %v753_v3 = vpop.f32.mrb[82].mxu0  ;;  %v1824_v23 = vpop.f32.mrb[82].mxu1  ;;  %v1921_v26 = vld [vmem:[%s3385_s1 + $0x40] sm:$0xff] }
 0x1b7   :  { %v1601_v40 = vsel %vm1518_vm2, %v1493_v9, 0.0  ;;  %v1366_v60 = vmul.f32 %v2853_v63, %v1040_v44  ;;  %v1043_v48 = vadd.f32 %v1042_v55, %v753_v3  ;;  %v755_v27 = vpop.f32.mrb[83].mxu0  ;;  %v1074_v43 = vpop.f32.mrb[83].mxu1  ;;  %v3232_v21 = vadd.f32 %v1824_v23, %v3430_v33 }
 0x1b8   :  { %v1602_v2 = vadd.f32 %v1601_v40, %v1600_v54  ;;  %v3235_v29 = vadd.f32 %v1074_v43, %v3431_v31 }
 0x1b9   :  { %v1430_v18 = vadd.f32 %v1921_v26, %v1366_v60  ;;  %v1367_v32 = vmul.f32 %v2855_v0, %v1043_v48  ;;  %v3432_v0 = vld [vmem:[#allocation10_spill] sm:$0xff]  ;;  %v3434_v26 = vld [vmem:[#allocation11_spill] sm:$0xff] }
 0x1bb   :  { %v1494_v42 = vmax.f32 %v1430_v18, 0.0  ;;  %v1431_v63 = vadd.f32 %v2974_v7, %v1367_v32  ;;  %v3433_v7 = vld [vmem:[#allocation8_spill] sm:$0xff]  ;;  %v3435_v32 = vld [vmem:[#allocation9_spill] sm:$0xff] }
 0x1bc   :  { %v758_v55 = vpop.f32.mrb[84].mxu0  ;;  %v1827_v51 = vpop.f32.mrb[84].mxu1 }
 0x1bd   :  { %v1603_v58 = vsel %vm1518_vm2, %v1494_v42, 0.0  ;;  %v1495_v9 = vmax.f32 %v1431_v63, 0.0  ;;  %v1048_v44 = vadd.f32 %v3190_v12, %v758_v55  ;;  %v760_v39 = vpop.f32.mrb[85].mxu0  ;;  %v1087_v16 = vpop.f32.mrb[85].mxu1  ;;  %v3247_v60 = vadd.f32 %v1827_v51, %v3432_v0  ;;  %v1923_v55 = vld [vmem:[%s3385_s1 + $0x58] sm:$0xff] }
 0x1be   :  { %v1604_v54 = vadd.f32 %v1603_v58, %v1602_v2  ;;  %v761_v57 = vpop.f32.mrb[86].mxu0  ;;  %v1828_v3 = vpop.f32.mrb[86].mxu1  ;;  %v3250_v48 = vadd.f32 %v1087_v16, %v3433_v7  ;;  %v1922_v2 = vld [vmem:[%s3385_s1 + $0x50] sm:$0xff] }
 0x1bf   :  { %v1605_v23 = vsel %vm1518_vm2, %v1495_v9, 0.0  ;;  %v1368_v40 = vmul.f32 %v2865_v11, %v1048_v44  ;;  %v763_v27 = vpop.f32.mrb[87].mxu0  ;;  %v1090_v43 = vpop.f32.mrb[87].mxu1  ;;  %v1051_v12 = vadd.f32 %v3193_v17, %v761_v57  ;;  %v3257_v18 = vadd.f32 %v1828_v3, %v3434_v26 }
 0x1c0   :  { %v1606_v33 = vadd.f32 %v1605_v23, %v1604_v54  ;;  %v3261_v42 = vadd.f32 %v1090_v43, %v3435_v32  ;;  %v3436_v23 = vld [vmem:[#allocation14_spill] sm:$0xff] }
 0x1c1   :  { %v1432_v31 = vadd.f32 %v1922_v2, %v1368_v40  ;;  %v1369_v11 = vmul.f32 %v2867_v20, %v1051_v12  ;;  %v3437_v12 = vld [vmem:[#allocation12_spill] sm:$0xff] }
 0x1c3   :  { %v1496_v63 = vmax.f32 %v1432_v31, 0.0  ;;  %v1433_v51 = vadd.f32 %v1923_v55, %v1369_v11 }
 0x1c4   :  { %v766_v17 = vpop.f32.mrb[88].mxu0  ;;  %v1831_v58 = vpop.f32.mrb[88].mxu1 }
 0x1c5   :  { %v1607_v9 = vsel %vm1518_vm2, %v1496_v63, 0.0  ;;  %v768_v44 = vpop.f32.mrb[89].mxu0  ;;  %v1103_v39 = vpop.f32.mrb[89].mxu1  ;;  %v1497_v54 = vmax.f32 %v1433_v51, 0.0  ;;  %v1056_v57 = vadd.f32 %v3207_v45, %v766_v17  ;;  %v3269_v40 = vadd.f32 %v1831_v58, %v3436_v23  ;;  %v3438_v45 = vld [vmem:[#allocation15_spill] sm:$0xff]  ;;  %v3439_v63 = vld [vmem:[#allocation13_spill] sm:$0xff] }
 0x1c6   :  { %v1608_v16 = vadd.f32 %v1607_v9, %v1606_v33  ;;  %v769_v20 = vpop.f32.mrb[90].mxu0  ;;  %v1832_v3 = vpop.f32.mrb[90].mxu1  ;;  %v3274_v2 = vadd.f32 %v1103_v39, %v3437_v12 }
 0x1c7   :  { %v771_v0 = vpop.f32.mrb[91].mxu0  ;;  %v1106_v7 = vpop.f32.mrb[91].mxu1  ;;  %v1609_v27 = vsel %vm1518_vm2, %v1497_v54, 0.0  ;;  %v1370_v43 = vmul.f32 %v2877_v46, %v1056_v57  ;;  %v1059_v33 = vadd.f32 %v3213_v13, %v769_v20  ;;  %v3279_v11 = vadd.f32 %v1832_v3, %v3438_v45 }
 0x1c8   :  { %v1610_v31 = vadd.f32 %v1609_v27, %v1608_v16  ;;  %v3283_v55 = vadd.f32 %v1106_v7, %v3439_v63  ;;  %v3441_v27 = vld [vmem:[#allocation16_spill] sm:$0xff] }
 0x1c9   :  { %v1434_v26 = vadd.f32 %v2995_v47, %v1370_v43  ;;  %v1371_v32 = vmul.f32 %v2879_v49, %v1059_v33  ;;  %v3440_v47 = vld [vmem:[#allocation18_spill] sm:$0xff]  ;;  %v1374_v49 = vmul.f32 %v2901_v4, %v3227_v52  ;;  %v1376_v33 = vmul.f32 %v2920_v5, %v3224_v8  ;;  %v1925_v8 = vld [vmem:[%s3385_s1 + $0x78] sm:$0xff] }
 0x1ca   :  { %v1924_v4 = vld [vmem:[%s3385_s1 + $0x70] sm:$0xff]  ;;  %s1952_s1 = smov [#allocation2]  }
 0x1cb   :  { %v1498_v51 = vmax.f32 %v1434_v26, 0.0  ;;  %v1435_v46 = vadd.f32 %v3008_v38, %v1371_v32  ;;  %v3443_v32 = vld [vmem:[#allocation17_spill] sm:$0xff]  ;;  %s1673_s29 = sshll.u32 %s1952_s1, 4  ;;  %s1674_s29 = int_to_ptr.vmem [resolvable:$true] %s1673_s29 }
 0x1cc   :  { %v774_v17 = vpop.f32.mrb[92].mxu0  ;;  %v1835_v58 = vpop.f32.mrb[92].mxu1  ;;  %s1926_s30 = scalar_lea.vmem %s1674_s29, 32  ;;  %p1931_p1 = scmp.lt.s32.totalorder %s1674_s29, %s1674_s29 }
 0x1cd   :  { %v1064_v9 = vadd.f32 %v3204_v15, %v774_v17  ;;  %v776_v44 = vpop.f32.mrb[93].mxu0  ;;  %v1119_v39 = vpop.f32.mrb[93].mxu1  ;;  %v1611_v13 = vsel %vm1518_vm2, %v1498_v51, 0.0  ;;  %v3289_v16 = vadd.f32 %v1835_v58, %v3440_v47  ;;  %v1499_v3 = vmax.f32 %v1435_v46, 0.0  ;;  %p1927_p0 = scmp.ne.s32.totalorder %s1674_s29, %s1926_s30  ;;  %p1932_p2 = scmp.lt.s32.totalorder %s1926_s30, %s1926_s30 }
 0x1ce   :  { %v777_v54 = vpop.f32.mrb[94].mxu0  ;;  %v1836_v57 = vpop.f32.mrb[94].mxu1  ;;  %v1612_v20 = vadd.f32 %v1611_v13, %v1610_v31  ;;  %v1375_v15 = vmul.f32 %v2903_v6, %v3235_v29  ;;  %v1120_v43 = vadd.f32 %v1119_v39, %v3441_v27  ;;  %v3442_v6 = vld [vmem:[#allocation19_spill] sm:$0xff]  ;;  %v1378_v58 = vmul.f32 %v2942_v36, %v3250_v48  ;;  %v3444_v44 = vld [vmem:[#allocation22_spill] sm:$0xff] }
 0x1cf   :  { %v779_v23 = vpop.f32.mrb[95].mxu0  ;;  %v1122_v0 = vpop.f32.mrb[95].mxu1  ;;  %v1372_v38 = vmul.f32 %v2889_v10, %v1064_v9  ;;  %v1613_v7 = vsel %vm1518_vm2, %v1499_v3, 0.0  ;;  %v1067_v12 = vadd.f32 %v3209_v14, %v777_v54  ;;  %v1438_v10 = vadd.f32 %v3029_v22, %v1374_v49  ;;  %v3446_v3 = vld [vmem:[#allocation20_spill] sm:$0xff]  ;;  %p1933_p3 = por %p1932_p2, %p1931_p1 }
 0x1d0   :  { %v1614_v26 = vadd.f32 %v1613_v7, %v1612_v20  ;;  %v3307_v29 = vadd.f32 %v1836_v57, %v3442_v6  ;;  %v1123_v63 = vadd.f32 %v1122_v0, %v3443_v32  ;;  %v1377_v14 = vmul.f32 %v2922_v24, %v3232_v21  ;;  %v3445_v57 = vld [vmem:[#allocation23_spill] sm:$0xff]  ;;  %v3447_v0 = vld [vmem:[#allocation25_spill] sm:$0xff] }
 0x1d1   :  { %v1436_v52 = vadd.f32 %v1924_v4, %v1372_v38  ;;  %v1373_v31 = vmul.f32 %v2891_v25, %v1067_v12  ;;  %v1439_v5 = vadd.f32 %v3047_v56, %v1375_v15  ;;  %v1440_v22 = vadd.f32 %v3035_v30, %v1376_v33  ;;  %v3448_v15 = vld [vmem:[#allocation24_spill] sm:$0xff]  ;;  %v3449_v33 = vld [vmem:[#allocation26_spill] sm:$0xff]  ;;  %p1934_p4 = pnand %p1933_p3, %p1927_p0 }
 0x1d2   :  { %v1502_v17 = vmax.f32 %v1438_v10, 0.0  ;;  %v1441_v39 = vadd.f32 %v3444_v44, %v1377_v14  ;;  %v1379_v56 = vmul.f32 %v2944_v35, %v3261_v42  ;;  %v1380_v54 = vmul.f32 %v2966_v28, %v3247_v60 }
 0x1d3   :  { %v1500_v45 = vmax.f32 %v1436_v52, 0.0  ;;  %v1437_v51 = vadd.f32 %v1925_v8, %v1373_v31  ;;  %v1503_v24 = vmax.f32 %v1439_v5, 0.0  ;;  %v1504_v47 = vmax.f32 %v1440_v22, 0.0  ;;  %v3451_v5 = vld [vmem:[#allocation21_spill] sm:$0xff] }
 0x1d4   :  { %v1619_v30 = vsel %vm1518_vm2, %v1502_v17, 0.0  ;;  %v1442_v49 = vadd.f32 %v3445_v57, %v1378_v58  ;;  %v1505_v48 = vmax.f32 %v1441_v39, 0.0  ;;  %v1381_v23 = vmul.f32 %v3446_v3, %v3257_v18 }
 0x1d5   :  { %v1615_v25 = vsel %vm1518_vm2, %v1500_v45, 0.0  ;;  %v1501_v9 = vmax.f32 %v1437_v51, 0.0  ;;  %v1621_v20 = vsel %vm1518_vm2, %v1503_v24, 0.0  ;;  %v1443_v35 = vadd.f32 %v3447_v0, %v1379_v56  ;;  %v3450_v45 = vld [vmem:[#allocation27_spill] sm:$0xff]  ;;  %v3452_v51 = vld [vmem:[#allocation29_spill] sm:$0xff] }
 0x1d6   :  { %v1616_v46 = vadd.f32 %v1615_v25, %v1614_v26  ;;  %v1623_v38 = vsel %vm1518_vm2, %v1504_v47, 0.0  ;;  %v1444_v7 = vadd.f32 %v3448_v15, %v1380_v54  ;;  %v1506_v27 = vmax.f32 %v1442_v49, 0.0 }
 0x1d7   :  { %v1617_v21 = vsel %vm1518_vm2, %v1501_v9, 0.0  ;;  %v1382_v28 = vmul.f32 %v3000_v53, %v3274_v2  ;;  %v1625_v12 = vsel %vm1518_vm2, %v1505_v48, 0.0  ;;  %v1445_v26 = vadd.f32 %v3449_v33, %v1381_v23  ;;  %v3454_v9 = vld [vmem:[#allocation30_spill] sm:$0xff] }
 0x1d8   :  { %v1618_v13 = vadd.f32 %v1617_v21, %v1616_v46  ;;  %v1507_v4 = vmax.f32 %v1443_v35, 0.0  ;;  %v1383_v18 = vmul.f32 %v3002_v62, %v3283_v55  ;;  %v1508_v10 = vmax.f32 %v1444_v7, 0.0  ;;  %v3453_v55 = vld [vmem:[#allocation28_spill] sm:$0xff] }
 0x1d9   :  { %v1627_v31 = vsel %vm1518_vm2, %v1506_v27, 0.0  ;;  %v1384_v6 = vmul.f32 %v3039_v41, %v3269_v40  ;;  %v1446_v32 = vadd.f32 %v3450_v45, %v1382_v28  ;;  %v1509_v53 = vmax.f32 %v1445_v26, 0.0 }
 0x1da   :  { %v1620_v36 = vadd.f32 %v1619_v30, %v1618_v13  ;;  %v1629_v2 = vsel %vm1518_vm2, %v1507_v4, 0.0  ;;  %v1385_v8 = vmul.f32 %v3451_v5, %v3279_v11  ;;  %v1447_v22 = vadd.f32 %v3452_v51, %v1383_v18 }
 0x1db   :  { %v1631_v62 = vsel %vm1518_vm2, %v1508_v10, 0.0  ;;  %v1448_v17 = vadd.f32 %v3453_v55, %v1384_v6  ;;  %v1510_v58 = vmax.f32 %v1446_v32, 0.0  ;;  %v1386_v46 = vmul.f32 %v3079_v61, %v1120_v43 }
 0x1dc   :  { %v1622_v42 = vadd.f32 %v1621_v20, %v1620_v36  ;;  %v1633_v40 = vsel %vm1518_vm2, %v1509_v53, 0.0  ;;  %v1449_v44 = vadd.f32 %v3454_v9, %v1385_v8  ;;  %v1511_v39 = vmax.f32 %v1447_v22, 0.0 }
 0x1dd   :  { %v1387_v24 = vmul.f32 %v3081_v1, %v1123_v63  ;;  %v1512_v11 = vmax.f32 %v1448_v17, 0.0  ;;  %v1635_v21 = vsel %vm1518_vm2, %v1510_v58, 0.0  ;;  %v1388_v13 = vmul.f32 %v3117_v59, %v3289_v16  ;;  %v3455_v63 = vld [vmem:[#allocation31_spill] sm:$0xff]  ;;  %v3456_v16 = vld [vmem:[#allocation32_spill] sm:$0xff] }
 0x1de   :  { %v1624_v60 = vadd.f32 %v1623_v38, %v1622_v42  ;;  %v1450_v47 = vadd.f32 %v3143_v34, %v1386_v46  ;;  %v1513_v54 = vmax.f32 %v1449_v44, 0.0  ;;  %v1637_v61 = vsel %vm1518_vm2, %v1511_v39, 0.0 }
 0x1df   :  { %v1389_v43 = vmul.f32 %v3119_v37, %v3307_v29  ;;  %v1451_v57 = vadd.f32 %v3157_v19, %v1387_v24  ;;  %v1639_v1 = vsel %vm1518_vm2, %v1512_v11, 0.0  ;;  %v1452_v36 = vadd.f32 %v3455_v63, %v1388_v13 }
 0x1e0   :  { %v1626_v52 = vadd.f32 %v1625_v12, %v1624_v60  ;;  %v1514_v48 = vmax.f32 %v1450_v47, 0.0  ;;  %v1582_v20 = vrot.slane %v3178_v50, 4  ;;  %v1641_v34 = vsel %vm1518_vm2, %v1513_v54, 0.0 }
 0x1e1   :  { %v1453_v3 = vadd.f32 %v3456_v16, %v1389_v43  ;;  %v1515_v23 = vmax.f32 %v1451_v57, 0.0  ;;  %v1516_v35 = vmax.f32 %v1452_v36, 0.0 }
 0x1e2   :  { %v1628_v14 = vadd.f32 %v1627_v31, %v1626_v52  ;;  %v1643_v37 = vsel %vm1518_vm2, %v1514_v48, 0.0  ;;  %v1583_v19 = vadd.f32 %v1582_v20, %v3178_v50 }
 0x1e3   :  { %v1517_v42 = vmax.f32 %v1453_v3, 0.0  ;;  %v1645_v38 = vsel %vm1518_vm2, %v1515_v23, 0.0  ;;  %v1647_v7 = vsel %vm1518_vm2, %v1516_v35, 0.0 }
 0x1e4   :  { %v1630_v25 = vadd.f32 %v1629_v2, %v1628_v14  ;;  %v1584_v27 = vrot.slane %v1583_v19, 2 }
 0x1e5   :  { %v1649_v60 = vsel %vm1518_vm2, %v1517_v42, 0.0 }
 0x1e6   :  { %v1632_v41 = vadd.f32 %v1631_v62, %v1630_v25  ;;  %v1585_v33 = vadd.f32 %v1584_v27, %v1583_v19 }
 0x1e8   :  { %v1634_v56 = vadd.f32 %v1633_v40, %v1632_v41  ;;  %v1586_v18 = vrot.slane %v1585_v33, 1 }
 0x1ea   :  { %v1636_v30 = vadd.f32 %v1635_v21, %v1634_v56  ;;  %v1587_v31 = vadd.f32 %v1586_v18, %v1585_v33 }
 0x1ec   :  { %v1638_v49 = vadd.f32 %v1637_v61, %v1636_v30  ;;  %v1658_v45 = vmul.f32 0.00390625, %v1587_v31 }
 0x1ee   :  { %v1640_v59 = vadd.f32 %v1639_v1, %v1638_v49 }
 0x1f0   :  { %v1642_v0 = vadd.f32 %v1641_v34, %v1640_v59 }
 0x1f2   :  { %v1644_v29 = vadd.f32 %v1643_v37, %v1642_v0 }
 0x1f4   :  { %v1646_v15 = vadd.f32 %v1645_v38, %v1644_v29 }
 0x1f6   :  { %v1648_v28 = vadd.f32 %v1647_v7, %v1646_v15 }
 0x1f8   :  { %v1650_v12 = vadd.f32 %v1649_v60, %v1648_v28 }
 0x1fa   :  { %v1651_v26 = vrot.slane %v1650_v12, 4 }
 0x1fc   :  { %v1652_v4 = vadd.f32 %v1651_v26, %v1650_v12 }
 0x1fe   :  { %v1653_v52 = vrot.slane %v1652_v4, 2 }
 0x200   :  { %v1654_v10 = vadd.f32 %v1653_v52, %v1652_v4 }
 0x202   :  { %v1655_v50 = vrot.slane %v1654_v10, 1 }
 0x204   :  { %v1656_v6 = vadd.f32 %v1655_v50, %v1654_v10 }
 0x206   :  { %v1659_v32 = vmul.f32 0.00390625, %v1656_v6 }
 0x208   :  { %v1663_v14 = vsel %vm1662_vm3, %v1659_v32, %v1658_v45 }
 0x209   :  { %1666 = vst.msk [vmem:[#allocation2] sm:$0x3] %vm1665_vm4, %v1663_v14 }
 0x20a   :  { %1937 = shalt.err (!%p1934_p4)
}
 0x20b   :  { %s1938_s6 = scalar_lea.hbm %s3387_s3, 32 }
 0x20c   :  { %p1939_p5 = scmp.ne.s32.totalorder %s3387_s3, %s1938_s6  ;;  %p1942_p6 = scmp.lt.u32.totalorder %s1938_s6, %s3387_s3 }
 0x20e   :  { %p1944_p7 = pnand %p1942_p6, %p1939_p5 }
 0x210   :  { %1947 = shalt.err (!%p1944_p7)
}
 0x211   :  { %1676 = dma.vmem_to_hbm [thread:$0]  %s1674_s29, 32, %s3387_s3, [#allocation3]  }
 0x212   :  { %1948 = dma.done.wait [#allocation3], 32  }
 0x213   :  { %1949 = vsyncadd [#allocation3], 4294967264 }
 0x214   :  { %1680 = vsyncpa [#allocation3], 1 }

</bundles_post_ra>
